<compile_context>
chip_gen: v7x
topology: tpu7x:2x2x1
jax: 0.10.0
libtpu: 0.0.40
codegen_flags: <defaults>
</compile_context>

<pallas_src>
import functools

import jax
import jax.numpy as jnp
from jax.experimental import pallas as pl
from jax.experimental.pallas import tpu as pltpu

# model hyper-parameters (consistent with the module's `size` argument)
D = 32            # size (hidden dim)
H = 4             # attention heads
DK = D // H       # per-head dim
DFF = 64          # feed-forward hidden units
EPS = 1e-12       # espnet LayerNorm eps
NEG_INF = float(jnp.finfo(jnp.float32).min)
MASK_NEG = 1e30   # additive mask bias magnitude


# ----------------------------------------------------------------------------
# math helpers — shared by the Pallas kernel and the pure-JAX reference
# ----------------------------------------------------------------------------
def _layernorm(x, g, b):
    # torch.nn.LayerNorm over last dim, biased variance, eps=1e-12
    mu = jnp.mean(x, axis=-1, keepdims=True)
    var = jnp.mean(jnp.square(x - mu), axis=-1, keepdims=True)
    return (x - mu) * jax.lax.rsqrt(var + EPS) * g + b


def _group_index(shape, axis, group):
    """floor(i / group) along `axis`, built without integer division.

    Uses an int32 iota converted to f32 and floor((i + 0.5) / group), which is
    exact for the small static extents used here and avoids s32 vector divide
    (not reliably lowered by Mosaic).
    """
    idx = jax.lax.broadcasted_iota(jnp.int32, shape, axis).astype(jnp.float32)
    return jnp.floor((idx + 0.5) * (1.0 / float(group)))


def _pick_batch_block(batch, t_len, rows_target=512):
    """One grid step by default (single-TensorCore chips pay pure overhead for
    extra steps).  Split into exactly 2 parallel steps (for v7x's 2 TCs) only
    when each step still gets >= rows_target rows of position-wise work."""
    if batch % 2 == 0 and (batch // 2) * t_len >= rows_target:
        return batch // 2
    return batch


# ----------------------------------------------------------------------------
# Pallas kernel: one batch *block* per grid step
# ----------------------------------------------------------------------------
def _decoder_layer_kernel(cn_en_ref, tgt_ref, mem_ref, memmask_ref,
                          w_self_qkv_ref, w_self_o_ref, w_src_ref,
                          w1_ref, w2_ref, vec_ref, out_ref,
                          *, mxu_dtype, approx_recip):
    n, d = tgt_ref.shape                      # n = bblk * T
    bblk = memmask_ref.shape[0]
    t_len = n // bblk
    tm_len = memmask_ref.shape[2] // H
    dcat = 2 * d                              # concatenated cn|en feature width

    def mm(a, b):
        # 2-D matmul on the MXU; operands in mxu_dtype (bf16 default), f32 acc.
        return jnp.dot(a.astype(mxu_dtype), b.astype(mxu_dtype),
                       preferred_element_type=jnp.float32)

    def attend(q2, k2, v2, n_heads, kv_rows, mask01):
        """Multi-head attention on already-projected q/k/v.

        q2: (n, dq); k2, v2: (bblk*kv_rows, dq);
        mask01: (bblk, 1, n_heads*kv_rows) 0/1 float or None.

        Head structure handled with a block-mask tile trick: K/V replicated
        once per head along sublanes and masked to that head's feature
        columns, so scores/context are per-batch matmuls only (no per-head MXU
        weight swaps, no width-DK lane slicing) and the context comes out in
        espnet's merged (h*dk + d) column order.
        """
        dq = q2.shape[-1]
        dk = dq // n_heads
        hk = n_heads * kv_rows
        q3 = q2.reshape(bblk, t_len, dq)
        k3 = k2.reshape(bblk, kv_rows, dq)
        v3 = v2.reshape(bblk, kv_rows, dq)

        # (1, hk, dq): 1 where feature column d belongs to the head owning row r
        r_head = _group_index((1, hk, dq), 1, kv_rows)
        c_head = _group_index((1, hk, dq), 2, dk)
        bm = (r_head == c_head).astype(jnp.float32)

        km = jnp.concatenate([k3] * n_heads, axis=1) * bm    # (bblk, hk, dq)
        vm = jnp.concatenate([v3] * n_heads, axis=1) * bm

        scores = jax.lax.dot_general(
            q3.astype(mxu_dtype), km.astype(mxu_dtype),
            (((2,), (2,)), ((0,), (0,))),
            preferred_element_type=jnp.float32) * (1.0 / float(dk) ** 0.5)
        if mask01 is not None:
            # additive 0 / -1e30 bias (broadcast over the query axis)
            scores = scores + (mask01 - 1.0) * MASK_NEG

        # softmax per head segment: a single per-row max is exact per head
        # (shift invariance), exp on the EUP, per-segment sums broadcast back
        # in one tiny f32 matmul with a block-diagonal 0/1 matrix.
        smax = jnp.max(scores, axis=-1, keepdims=True)
        p = jnp.exp(scores - smax)                           # (bblk, t, hk)
        si = _group_index((hk, hk), 0, kv_rows)
        sj = _group_index((hk, hk), 1, kv_rows)
        seg = (si == sj).astype(jnp.float32)                 # (hk, hk)
        p2 = p.reshape(n, hk)
        denom = jnp.dot(p2, seg, preferred_element_type=jnp.float32)  # f32 sums
        attn = (p2 * pl.reciprocal(denom, approx=approx_recip)
                ).reshape(bblk, t_len, hk)
        if mask01 is not None:
            attn = attn * mask01                             # parity w/ module

        ctx = jax.lax.dot_general(
            attn.astype(mxu_dtype), vm.astype(mxu_dtype),
            (((2,), (1,)), ((0,), (0,))),
            preferred_element_type=jnp.float32)              # (bblk, t, dq)
        return ctx.reshape(n, dq)

    # ---- packed bias / LayerNorm parameters ----
    b_self_qkv = vec_ref[0:1, :]
    b_self_o = vec_ref[1:2, 0:d]
    b_src_q = vec_ref[2:3, 0:d]
    b_src_kv = vec_ref[3:4, 0:2 * d]
    b_src_o = vec_ref[4:5, 0:d]
    ln_g = [vec_ref[5 + i:6 + i, 0:d] for i in range(4)]
    ln_b = [vec_ref[9 + i:10 + i, 0:d] for i in range(4)]
    b1 = vec_ref[13:14, 0:DFF]
    b2 = vec_ref[14:15, 0:d]

    tgt = tgt_ref[...]                        # (n, D)
    cn_w = cn_en_ref[:, 0:1]                  # (n, 1)
    en_w = cn_en_ref[:, 1:2]
    mem = mem_ref[...]                        # (bblk*Tm, D)
    m01 = memmask_ref[...]                    # (bblk, 1, H*Tm), 1 = valid

    # token-class weighting + pre-norm (normalize_before=True; residuals are
    # the pre-norm weighted values)
    cn_tgt = cn_w * tgt
    en_tgt = en_w * tgt
    cn_n = _layernorm(cn_tgt, ln_g[0], ln_b[0])
    en_n = _layernorm(en_tgt, ln_g[1], ln_b[1])

    # fused cn/en self-attention: both branches' QKV projections in one
    # block-diagonal matmul on the lane-concatenated input, attention run as
    # 2*H heads, both output projections summed into one (2D, D) matmul.
    # The original forward passes mask=None to self_attn (tgt_mask unused).
    x_cat = jnp.concatenate([cn_n, en_n], axis=-1)           # (n, 2D)
    qkv = mm(x_cat, w_self_qkv_ref[...]) + b_self_qkv        # (n, 6D)
    ctx = attend(qkv[:, 0:dcat], qkv[:, dcat:2 * dcat],
                 qkv[:, 2 * dcat:3 * dcat],
                 n_heads=2 * H, kv_rows=t_len, mask01=None)
    x = cn_tgt + en_tgt + mm(ctx, w_self_o_ref[...]) + b_self_o

    # source attention (memory mask applied), fused K|V projection
    residual = x
    xn = _layernorm(x, ln_g[2], ln_b[2])
    q = mm(xn, w_src_ref[:, 0:d]) + b_src_q
    kv = mm(mem, w_src_ref[:, d:3 * d]) + b_src_kv
    ctx = attend(q, kv[:, 0:d], kv[:, d:2 * d],
                 n_heads=H, kv_rows=tm_len, mask01=m01)
    x = residual + mm(ctx, w_src_ref[:, 3 * d:4 * d]) + b_src_o

    # position-wise feed-forward (ReLU), direct (n, D) store (no lane-dense
    # concat epilogue — the relayouts cost more than the masked stores here)
    residual = x
    xn = _layernorm(x, ln_g[3], ln_b[3])
    hid = jnp.maximum(mm(xn, w1_ref[...]) + b1, 0.0)
    out_ref[...] = residual + mm(hid, w2_ref[...]) + b2

    # TODO(synk): cache-based incremental decode (cache is not None) and the
    # concat_after=True branch are not implemented (module defaults used).


# ----------------------------------------------------------------------------
# wrapper: parameter packing + pallas_call
# ----------------------------------------------------------------------------
def _pack_params(params):
    """Re-pack raw per-module weights into the fused layout the kernel uses."""
    attn_w, attn_b, norm_g, norm_b, w1, b1, w2, b2 = params
    f32 = jnp.float32
    z = jnp.zeros((D, D), f32)
    wq_cn, wk_cn, wv_cn, wo_cn = [attn_w[0, i] for i in range(4)]
    wq_en, wk_en, wv_en, wo_en = [attn_w[1, i] for i in range(4)]
    wq_s, wk_s, wv_s, wo_s = [attn_w[2, i] for i in range(4)]
    bq_cn, bk_cn, bv_cn, bo_cn = [attn_b[0, i] for i in range(4)]
    bq_en, bk_en, bv_en, bo_en = [attn_b[1, i] for i in range(4)]
    bq_s, bk_s, bv_s, bo_s = [attn_b[2, i] for i in range(4)]

    # block-diagonal fused QKV for the [cn | en] concatenated input (2D -> 6D):
    # output columns = [q_cn q_en | k_cn k_en | v_cn v_en]
    w_self_qkv = jnp.concatenate([
        jnp.concatenate([wq_cn, z, wk_cn, z, wv_cn, z], axis=1),
        jnp.concatenate([z, wq_en, z, wk_en, z, wv_en], axis=1)], axis=0)
    # summed output projection: ctx_cat @ [wo_cn ; wo_en] == out_cn + out_en
    w_self_o = jnp.concatenate([wo_cn, wo_en], axis=0)          # (2D, D)
    w_src = jnp.concatenate([wq_s, wk_s, wv_s, wo_s], axis=1)   # (D, 4D)

    vec = jnp.zeros((16, 6 * D), f32)
    vec = vec.at[0, :].set(
        jnp.concatenate([bq_cn, bq_en, bk_cn, bk_en, bv_cn, bv_en]))
    vec = vec.at[1, :D].set(bo_cn + bo_en)
    vec = vec.at[2, :D].set(bq_s)
    vec = vec.at[3, :2 * D].set(jnp.concatenate([bk_s, bv_s]))
    vec = vec.at[4, :D].set(bo_s)
    vec = vec.at[5:9, :D].set(norm_g)
    vec = vec.at[9:13, :D].set(norm_b)
    vec = vec.at[13, :DFF].set(b1)
    vec = vec.at[14, :D].set(b2)
    return w_self_qkv, w_self_o, w_src, w1, w2, vec


def decoder_layer_pallas(tgt, tgt_mask, memory, memory_mask, token_id,
                         chn_start, chn_end, eng_start, eng_end,
                         sym_low, sym_up, params, *,
                         mxu_dtype=jnp.bfloat16,   # bf16 operands, f32 acc
                         approx_recip=True,        # EUP approximate reciprocal
                         batch_block=None):
    B, T, Dm = tgt.shape
    Tm = memory.shape[1]
    assert Dm == D
    f32 = jnp.float32

    # token-class weighting, computed lane-parallel in plain JAX so the kernel
    # never sees int32 token ids or the six range scalars.
    tok = token_id.astype(jnp.int32)
    cn_loc = (tok >= chn_start).astype(f32) * (tok <= chn_end).astype(f32)
    en_loc = (tok >= eng_start).astype(f32) * (tok <= eng_end).astype(f32)
    sym_loc = (tok <= sym_low).astype(f32) * (tok >= sym_up).astype(f32)
    cn_w = cn_loc + 0.1 * en_loc + 0.5 * sym_loc
    en_w = en_loc + 0.1 * cn_loc + 0.5 * sym_loc
    cn_en = jnp.stack([cn_w, en_w], axis=-1).reshape(B * T, 2)

    # memory mask replicated per head: (B, 1, H*Tm), index h*Tm + k -> mask[k]
    m01 = jnp.tile(memory_mask.astype(f32)[:, None, :], (1, 1, H))

    w_self_qkv, w_self_o, w_src, w1, w2, vec = _pack_params(params)

    bblk = _pick_batch_block(B, T) if batch_block is None else batch_block
    assert B % bblk == 0
    grid = (B // bblk,)

    kernel = functools.partial(_decoder_layer_kernel,
                               mxu_dtype=mxu_dtype, approx_recip=approx_recip)

    grid_spec = pltpu.PrefetchScalarGridSpec(
        num_scalar_prefetch=0,
        grid=grid,
        in_specs=[
            pl.BlockSpec((bblk * T, 2), lambda b: (b, 0)),          # cn/en weights
            pl.BlockSpec((bblk * T, Dm), lambda b: (b, 0)),         # tgt (flat)
            pl.BlockSpec((bblk * Tm, Dm), lambda b: (b, 0)),        # memory (flat)
            pl.BlockSpec((bblk, 1, H * Tm), lambda b: (b, 0, 0)),   # memory mask
            pl.BlockSpec((2 * Dm, 6 * Dm), lambda b: (0, 0)),       # fused self QKV W
            pl.BlockSpec((2 * Dm, Dm), lambda b: (0, 0)),           # summed self out W
            pl.BlockSpec((Dm, 4 * Dm), lambda b: (0, 0)),           # src q|k|v|o W
            pl.BlockSpec((Dm, DFF), lambda b: (0, 0)),              # FFN w1
            pl.BlockSpec((DFF, Dm), lambda b: (0, 0)),              # FFN w2
            pl.BlockSpec((16, 6 * Dm), lambda b: (0, 0)),           # packed biases/LN
        ],
        out_specs=pl.BlockSpec((bblk * T, Dm), lambda b: (b, 0)),
    )

    out = pl.pallas_call(
        kernel,
        grid_spec=grid_spec,
        out_shape=jax.ShapeDtypeStruct((B * T, Dm), jnp.float32),
        compiler_params=pltpu.CompilerParams(
            dimension_semantics=("parallel",)),
    )(cn_en, tgt.reshape(B * T, Dm), memory.reshape(B * Tm, Dm), m01,
      w_self_qkv, w_self_o, w_src, w1, w2, vec)

    x = out.reshape(B, T, Dm)

    # mirror the module's return tuple
    return (x, tgt_mask, memory, memory_mask, token_id,
            chn_start, chn_end, eng_start, eng_end, sym_low, sym_up)


# ----------------------------------------------------------------------------
# pure-JAX reference (same math, no Pallas) for the correctness check.
# Matmul operands are cast to `mxu_dtype` so the kernel can be compared at
# matched precision (f32 accumulation in both).
# ----------------------------------------------------------------------------
def decoder_layer_reference(tgt, memory, memory_mask, token_id,
                            chn_start, chn_end, eng_start, eng_end,
                            sym_low, sym_up, params, *,
                            mxu_dtype=jnp.float32):
    attn_w, attn_b, norm_g, norm_b, w1, b1, w2, b2 = params
    B, T, Dm = tgt.shape
    Tm = memory.shape[1]
    hp = jax.lax.Precision.HIGHEST
    f32 = jnp.float32

    def mmr(a, w):
        return jnp.matmul(a.astype(mxu_dtype), w.astype(mxu_dtype),
                          precision=hp, preferred_element_type=f32)

    tok = token_id.astype(jnp.int32)
    cn_loc = (tok >= chn_start).astype(f32) * (tok <= chn_end).astype(f32)
    en_loc = (tok >= eng_start).astype(f32) * (tok <= eng_end).astype(f32)
    sym_loc = (tok <= sym_low).astype(f32) * (tok >= sym_up).astype(f32)
    cn_mask = (cn_loc + 0.1 * en_loc + 0.5 * sym_loc)[..., None]
    en_mask = (en_loc + 0.1 * cn_loc + 0.5 * sym_loc)[..., None]
    cn_tgt = cn_mask * tgt
    en_tgt = en_mask * tgt

    def mha(i, q_in, kv_in, mask):
        wq, wk, wv, wo = [attn_w[i, j] for j in range(4)]
        bq, bk, bv, bo = [attn_b[i, j] for j in range(4)]
        Tq, Tk = q_in.shape[1], kv_in.shape[1]
        q = (mmr(q_in, wq) + bq).reshape(B, Tq, H, DK)
        k = (mmr(kv_in, wk) + bk).reshape(B, Tk, H, DK)
        v = (mmr(kv_in, wv) + bv).reshape(B, Tk, H, DK)
        scores = jnp.einsum('bqhd,bkhd->bhqk', q.astype(mxu_dtype),
                            k.astype(mxu_dtype), precision=hp,
                            preferred_element_type=f32) / float(DK) ** 0.5
        m = None
        if mask is not None:
            m = mask[:, None, :, :] > 0.0                 # (B, 1, 1, Tk)
            scores = jnp.where(m, scores, NEG_INF)
        attn = jax.nn.softmax(scores, axis=-1)
        if m is not None:
            attn = jnp.where(m, attn, 0.0)
        ctx = jnp.einsum('bhqk,bkhd->bqhd', attn.astype(mxu_dtype),
                         v.astype(mxu_dtype), precision=hp,
                         preferred_element_type=f32).reshape(B, Tq, Dm)
        return mmr(ctx, wo) + bo

    cn_n = _layernorm(cn_tgt, norm_g[0], norm_b[0])
    en_n = _layernorm(en_tgt, norm_g[1], norm_b[1])
    cn_x = cn_tgt + mha(0, cn_n, cn_n, None)
    en_x = en_tgt + mha(1, en_n, en_n, None)
    x = cn_x + en_x
    res = x
    xn = _layernorm(x, norm_g[2], norm_b[2])
    mm3 = memory_mask.astype(f32).reshape(B, 1, Tm)
    x = res + mha(2, xn, memory, mm3)
    res = x
    xn = _layernorm(x, norm_g[3], norm_b[3])
    hid = jnp.maximum(mmr(xn, w1) + b1, 0.0)
    return res + mmr(hid, w2) + b2


# ----------------------------------------------------------------------------
if __name__ == "__main__":
    key = jax.random.PRNGKey(0)
    B, T, Tm = 2, 8, 16
    ks = jax.random.split(key, 10)

    tgt = jax.random.normal(ks[0], (B, T, D), jnp.float32)
    memory = jax.random.normal(ks[1], (B, Tm, D), jnp.float32)
    token_id = jax.random.randint(ks[2], (B, T), 0, 50, dtype=jnp.int32)
    lengths = jnp.array([Tm, Tm - 4])
    memory_mask = (jnp.arange(Tm)[None, :] < lengths[:, None]).astype(jnp.float32)
    tgt_mask = jnp.tril(jnp.ones((T, T), jnp.float32))[None].repeat(B, axis=0)  # passthrough

    chn_start, chn_end = 10, 20
    eng_start, eng_end = 30, 40
    sym_low, sym_up = 5, 1

    def lin_init(kk, fan_in, shape):
        return jax.random.normal(kk, shape, jnp.float32) / jnp.sqrt(float(fan_in))

    attn_w = lin_init(ks[3], D, (3, 4, D, D))            # [attn][q,k,v,out] (in,out)
    attn_b = 0.02 * jax.random.normal(ks[4], (3, 4, D), jnp.float32)
    norm_g = jnp.ones((4, D), jnp.float32)               # norm1_cn, norm1_en, norm2, norm3
    norm_b = jnp.zeros((4, D), jnp.float32)
    w1 = lin_init(ks[5], D, (D, DFF))
    b1 = 0.02 * jax.random.normal(ks[6], (DFF,), jnp.float32)
    w2 = lin_init(ks[7], DFF, (DFF, D))
    b2 = 0.02 * jax.random.normal(ks[8], (D,), jnp.float32)
    params = (attn_w, attn_b, norm_g, norm_b, w1, b1, w2, b2)

    MXU_DTYPE = jnp.bfloat16   # bf16 MXU operands, f32 accumulation (default)

    outs = decoder_layer_pallas(tgt, tgt_mask, memory, memory_mask, token_id,
                                chn_start, chn_end, eng_start, eng_end,
                                sym_low, sym_up, params, mxu_dtype=MXU_DTYPE)
    x = jax.block_until_ready(outs[0])

    x_ref = decoder_layer_reference(tgt, memory, memory_mask, token_id,
                                    chn_start, chn_end, eng_start, eng_end,
                                    sym_low, sym_up, params,
                                    mxu_dtype=MXU_DTYPE)

    assert x.shape == (B, T, D)
    assert bool(jnp.all(jnp.isfinite(x)))
    # The reference casts matmul operands to the same mxu_dtype, so residual
    # differences come only from the EUP approximate reciprocal, the global
    # (vs per-head) softmax max shift, and accumulation-order effects — all
    # well inside this tolerance (observed ~1e-3 with bf16 operands).
    assert bool(jnp.allclose(x, x_ref, atol=2e-2, rtol=2e-2)), \
        f"max abs diff {float(jnp.max(jnp.abs(x - x_ref)))}"
    print("KERNEL_OK")
</pallas_src>

<mosaic_0001>
module attributes {stable_mosaic.version = 11 : i64} {
  func.func @_decoder_layer_kernel(%arg0: i32, %arg1: memref<16x2xf32, #tpu.memory_space<vmem>>, %arg2: memref<16x32xf32, #tpu.memory_space<vmem>>, %arg3: memref<32x32xf32, #tpu.memory_space<vmem>>, %arg4: memref<2x1x64xf32, #tpu.memory_space<vmem>>, %arg5: memref<64x192xf32, #tpu.memory_space<vmem>>, %arg6: memref<64x32xf32, #tpu.memory_space<vmem>>, %arg7: memref<32x128xf32, #tpu.memory_space<vmem>>, %arg8: memref<32x64xf32, #tpu.memory_space<vmem>>, %arg9: memref<64x32xf32, #tpu.memory_space<vmem>>, %arg10: memref<16x192xf32, #tpu.memory_space<vmem>>, %arg11: memref<16x32xf32, #tpu.memory_space<vmem>>) attributes {dimension_semantics = [#tpu.dimension_semantics<parallel>], iteration_bounds = array<i64: 1>, scalar_prefetch = 0 : i64, scratch_operands = 0 : i64, tpu.core_type = #tpu.core_type<tc>, window_params = [{transform_indices = @transform_0, window_bounds = array<i64: 16, 2>}, {transform_indices = @transform_1, window_bounds = array<i64: 16, 32>}, {transform_indices = @transform_2, window_bounds = array<i64: 32, 32>}, {transform_indices = @transform_3, window_bounds = array<i64: 2, 1, 64>}, {pipeline_mode = #tpu.pipeline_mode<synchronous>, transform_indices = @transform_4, window_bounds = array<i64: 64, 192>}, {pipeline_mode = #tpu.pipeline_mode<synchronous>, transform_indices = @transform_5, window_bounds = array<i64: 64, 32>}, {pipeline_mode = #tpu.pipeline_mode<synchronous>, transform_indices = @transform_6, window_bounds = array<i64: 32, 128>}, {pipeline_mode = #tpu.pipeline_mode<synchronous>, transform_indices = @transform_7, window_bounds = array<i64: 32, 64>}, {pipeline_mode = #tpu.pipeline_mode<synchronous>, transform_indices = @transform_8, window_bounds = array<i64: 64, 32>}, {pipeline_mode = #tpu.pipeline_mode<synchronous>, transform_indices = @transform_9, window_bounds = array<i64: 16, 192>}, {transform_indices = @transform_10, window_bounds = array<i64: 16, 32>}]} {
    %c0 = arith.constant 0 : index
    %c0_0 = arith.constant 0 : index
    %0 = vector.load %arg10[%c0, %c0_0] : memref<16x192xf32, #tpu.memory_space<vmem>>, vector<1x192xf32>
    %c1 = arith.constant 1 : index
    %c0_1 = arith.constant 0 : index
    %1 = vector.load %arg10[%c1, %c0_1] : memref<16x192xf32, #tpu.memory_space<vmem>>, vector<1x32xf32>
    %c2 = arith.constant 2 : index
    %c0_2 = arith.constant 0 : index
    %2 = vector.load %arg10[%c2, %c0_2] : memref<16x192xf32, #tpu.memory_space<vmem>>, vector<1x32xf32>
    %c3 = arith.constant 3 : index
    %c0_3 = arith.constant 0 : index
    %3 = vector.load %arg10[%c3, %c0_3] : memref<16x192xf32, #tpu.memory_space<vmem>>, vector<1x64xf32>
    %c4 = arith.constant 4 : index
    %c0_4 = arith.constant 0 : index
    %4 = vector.load %arg10[%c4, %c0_4] : memref<16x192xf32, #tpu.memory_space<vmem>>, vector<1x32xf32>
    %c5 = arith.constant 5 : index
    %c0_5 = arith.constant 0 : index
    %5 = vector.load %arg10[%c5, %c0_5] : memref<16x192xf32, #tpu.memory_space<vmem>>, vector<1x32xf32>
    %c6 = arith.constant 6 : index
    %c0_6 = arith.constant 0 : index
    %6 = vector.load %arg10[%c6, %c0_6] : memref<16x192xf32, #tpu.memory_space<vmem>>, vector<1x32xf32>
    %c7 = arith.constant 7 : index
    %c0_7 = arith.constant 0 : index
    %7 = vector.load %arg10[%c7, %c0_7] : memref<16x192xf32, #tpu.memory_space<vmem>>, vector<1x32xf32>
    %c8 = arith.constant 8 : index
    %c0_8 = arith.constant 0 : index
    %8 = vector.load %arg10[%c8, %c0_8] : memref<16x192xf32, #tpu.memory_space<vmem>>, vector<1x32xf32>
    %c9 = arith.constant 9 : index
    %c0_9 = arith.constant 0 : index
    %9 = vector.load %arg10[%c9, %c0_9] : memref<16x192xf32, #tpu.memory_space<vmem>>, vector<1x32xf32>
    %c10 = arith.constant 10 : index
    %c0_10 = arith.constant 0 : index
    %10 = vector.load %arg10[%c10, %c0_10] : memref<16x192xf32, #tpu.memory_space<vmem>>, vector<1x32xf32>
    %c11 = arith.constant 11 : index
    %c0_11 = arith.constant 0 : index
    %11 = vector.load %arg10[%c11, %c0_11] : memref<16x192xf32, #tpu.memory_space<vmem>>, vector<1x32xf32>
    %c12 = arith.constant 12 : index
    %c0_12 = arith.constant 0 : index
    %12 = vector.load %arg10[%c12, %c0_12] : memref<16x192xf32, #tpu.memory_space<vmem>>, vector<1x32xf32>
    %c13 = arith.constant 13 : index
    %c0_13 = arith.constant 0 : index
    %13 = vector.load %arg10[%c13, %c0_13] : memref<16x192xf32, #tpu.memory_space<vmem>>, vector<1x64xf32>
    %c14 = arith.constant 14 : index
    %c0_14 = arith.constant 0 : index
    %14 = vector.load %arg10[%c14, %c0_14] : memref<16x192xf32, #tpu.memory_space<vmem>>, vector<1x32xf32>
    %c0_15 = arith.constant 0 : index
    %c0_16 = arith.constant 0 : index
    %15 = vector.load %arg2[%c0_15, %c0_16] : memref<16x32xf32, #tpu.memory_space<vmem>>, vector<16x32xf32>
    %c0_17 = arith.constant 0 : index
    %c0_18 = arith.constant 0 : index
    %16 = vector.load %arg1[%c0_17, %c0_18] : memref<16x2xf32, #tpu.memory_space<vmem>>, vector<16x1xf32>
    %c0_19 = arith.constant 0 : index
    %c1_20 = arith.constant 1 : index
    %17 = vector.load %arg1[%c0_19, %c1_20] : memref<16x2xf32, #tpu.memory_space<vmem>>, vector<16x1xf32>
    %c0_21 = arith.constant 0 : index
    %c0_22 = arith.constant 0 : index
    %18 = vector.load %arg3[%c0_21, %c0_22] : memref<32x32xf32, #tpu.memory_space<vmem>>, vector<32x32xf32>
    %c0_23 = arith.constant 0 : index
    %c0_24 = arith.constant 0 : index
    %c0_25 = arith.constant 0 : index
    %19 = vector.load %arg4[%c0_23, %c0_24, %c0_25] : memref<2x1x64xf32, #tpu.memory_space<vmem>>, vector<2x1x64xf32>
    %20 = vector.broadcast %16 : vector<16x1xf32> to vector<16x32xf32>
    %21 = arith.mulf %20, %15 : vector<16x32xf32>
    %22 = vector.broadcast %17 : vector<16x1xf32> to vector<16x32xf32>
    %23 = arith.mulf %22, %15 : vector<16x32xf32>
    %cst = arith.constant dense<0.000000e+00> : vector<16xf32>
    %24 = vector.multi_reduction <add>, %21, %cst [1] : vector<16x32xf32> to vector<16xf32>
    %25 = vector.shape_cast %24 : vector<16xf32> to vector<16x1xf32>
    %cst_26 = arith.constant 3.200000e+01 : f32
    %26 = vector.broadcast %cst_26 : f32 to vector<16x1xf32>
    %27 = arith.divf %25, %26 : vector<16x1xf32>
    %28 = vector.broadcast %27 : vector<16x1xf32> to vector<16x32xf32>
    %29 = arith.subf %21, %28 : vector<16x32xf32>
    %30 = arith.mulf %29, %29 : vector<16x32xf32>
    %cst_27 = arith.constant dense<0.000000e+00> : vector<16xf32>
    %31 = vector.multi_reduction <add>, %30, %cst_27 [1] : vector<16x32xf32> to vector<16xf32>
    %32 = vector.shape_cast %31 : vector<16xf32> to vector<16x1xf32>
    %cst_28 = arith.constant 3.200000e+01 : f32
    %33 = vector.broadcast %cst_28 : f32 to vector<16x1xf32>
    %34 = arith.divf %32, %33 : vector<16x1xf32>
    %35 = vector.broadcast %27 : vector<16x1xf32> to vector<16x32xf32>
    %36 = arith.subf %21, %35 : vector<16x32xf32>
    %cst_29 = arith.constant 9.99999996E-13 : f32
    %37 = vector.broadcast %cst_29 : f32 to vector<16x1xf32>
    %38 = arith.addf %34, %37 : vector<16x1xf32>
    %39 = math.rsqrt %38 : vector<16x1xf32>
    %40 = vector.broadcast %39 : vector<16x1xf32> to vector<16x32xf32>
    %41 = arith.mulf %36, %40 : vector<16x32xf32>
    %42 = vector.broadcast %5 : vector<1x32xf32> to vector<16x32xf32>
    %43 = arith.mulf %41, %42 : vector<16x32xf32>
    %44 = vector.broadcast %9 : vector<1x32xf32> to vector<16x32xf32>
    %45 = arith.addf %43, %44 : vector<16x32xf32>
    %cst_30 = arith.constant dense<0.000000e+00> : vector<16xf32>
    %46 = vector.multi_reduction <add>, %23, %cst_30 [1] : vector<16x32xf32> to vector<16xf32>
    %47 = vector.shape_cast %46 : vector<16xf32> to vector<16x1xf32>
    %cst_31 = arith.constant 3.200000e+01 : f32
    %48 = vector.broadcast %cst_31 : f32 to vector<16x1xf32>
    %49 = arith.divf %47, %48 : vector<16x1xf32>
    %50 = vector.broadcast %49 : vector<16x1xf32> to vector<16x32xf32>
    %51 = arith.subf %23, %50 : vector<16x32xf32>
    %52 = arith.mulf %51, %51 : vector<16x32xf32>
    %cst_32 = arith.constant dense<0.000000e+00> : vector<16xf32>
    %53 = vector.multi_reduction <add>, %52, %cst_32 [1] : vector<16x32xf32> to vector<16xf32>
    %54 = vector.shape_cast %53 : vector<16xf32> to vector<16x1xf32>
    %cst_33 = arith.constant 3.200000e+01 : f32
    %55 = vector.broadcast %cst_33 : f32 to vector<16x1xf32>
    %56 = arith.divf %54, %55 : vector<16x1xf32>
    %57 = vector.broadcast %49 : vector<16x1xf32> to vector<16x32xf32>
    %58 = arith.subf %23, %57 : vector<16x32xf32>
    %cst_34 = arith.constant 9.99999996E-13 : f32
    %59 = vector.broadcast %cst_34 : f32 to vector<16x1xf32>
    %60 = arith.addf %56, %59 : vector<16x1xf32>
    %61 = math.rsqrt %60 : vector<16x1xf32>
    %62 = vector.broadcast %61 : vector<16x1xf32> to vector<16x32xf32>
    %63 = arith.mulf %58, %62 : vector<16x32xf32>
    %64 = vector.broadcast %6 : vector<1x32xf32> to vector<16x32xf32>
    %65 = arith.mulf %63, %64 : vector<16x32xf32>
    %66 = vector.broadcast %10 : vector<1x32xf32> to vector<16x32xf32>
    %67 = arith.addf %65, %66 : vector<16x32xf32>
    %68 = tpu.concatenate %45, %67 in 1 : vector<16x32xf32>, vector<16x32xf32> -> vector<16x64xf32>
    %c0_35 = arith.constant 0 : index
    %c0_36 = arith.constant 0 : index
    %69 = vector.load %arg5[%c0_35, %c0_36] : memref<64x192xf32, #tpu.memory_space<vmem>>, vector<64x192xf32>
    %70 = arith.truncf %68 : vector<16x64xf32> to vector<16x64xbf16>
    %71 = arith.truncf %69 : vector<64x192xf32> to vector<64x192xbf16>
    %cst_37 = arith.constant dense<0.000000e+00> : vector<16x192xf32>
    %72 = tpu.matmul %70, %71, %cst_37 {dimension_numbers = #tpu.dot_dimension_numbers<[1], [0], [0], [1], [0, 0, 1, 1], [], []>} : vector<16x64xbf16>, vector<64x192xbf16>, vector<16x192xf32> -> vector<16x192xf32>
    %73 = vector.broadcast %0 : vector<1x192xf32> to vector<16x192xf32>
    %74 = arith.addf %72, %73 : vector<16x192xf32>
    %75 = vector.extract_strided_slice %74 {offsets = [0, 0], sizes = [16, 64], strides = [1, 1]} : vector<16x192xf32> to vector<16x64xf32>
    %76 = vector.extract_strided_slice %74 {offsets = [0, 64], sizes = [16, 64], strides = [1, 1]} : vector<16x192xf32> to vector<16x64xf32>
    %77 = vector.extract_strided_slice %74 {offsets = [0, 128], sizes = [16, 64], strides = [1, 1]} : vector<16x192xf32> to vector<16x64xf32>
    %78 = vector.shape_cast %75 : vector<16x64xf32> to vector<2x8x64xf32>
    %79 = vector.shape_cast %76 : vector<16x64xf32> to vector<2x8x64xf32>
    %80 = vector.shape_cast %77 : vector<16x64xf32> to vector<2x8x64xf32>
    %81 = tpu.iota {dimensions = array<i32: 1>} : vector<1x64x64xi32>
    %82 = arith.sitofp %81 : vector<1x64x64xi32> to vector<1x64x64xf32>
    %cst_38 = arith.constant 5.000000e-01 : f32
    %83 = vector.broadcast %cst_38 : f32 to vector<1x64x64xf32>
    %84 = arith.addf %82, %83 : vector<1x64x64xf32>
    %cst_39 = arith.constant 1.250000e-01 : f32
    %85 = vector.broadcast %cst_39 : f32 to vector<1x64x64xf32>
    %86 = arith.mulf %84, %85 : vector<1x64x64xf32>
    %87 = math.floor %86 : vector<1x64x64xf32>
    %88 = tpu.iota {dimensions = array<i32: 2>} : vector<1x64x64xi32>
    %89 = arith.sitofp %88 : vector<1x64x64xi32> to vector<1x64x64xf32>
    %cst_40 = arith.constant 5.000000e-01 : f32
    %90 = vector.broadcast %cst_40 : f32 to vector<1x64x64xf32>
    %91 = arith.addf %89, %90 : vector<1x64x64xf32>
    %cst_41 = arith.constant 1.250000e-01 : f32
    %92 = vector.broadcast %cst_41 : f32 to vector<1x64x64xf32>
    %93 = arith.mulf %91, %92 : vector<1x64x64xf32>
    %94 = math.floor %93 : vector<1x64x64xf32>
    %95 = arith.cmpf oeq, %87, %94 : vector<1x64x64xf32>
    %96 = arith.extui %95 : vector<1x64x64xi1> to vector<1x64x64xi32>
    %97 = arith.sitofp %96 : vector<1x64x64xi32> to vector<1x64x64xf32>
    %98 = tpu.concatenate %79, %79, %79, %79, %79, %79, %79, %79 in 1 : vector<2x8x64xf32>, vector<2x8x64xf32>, vector<2x8x64xf32>, vector<2x8x64xf32>, vector<2x8x64xf32>, vector<2x8x64xf32>, vector<2x8x64xf32>, vector<2x8x64xf32> -> vector<2x64x64xf32>
    %99 = vector.broadcast %97 : vector<1x64x64xf32> to vector<2x64x64xf32>
    %100 = arith.mulf %98, %99 : vector<2x64x64xf32>
    %101 = tpu.concatenate %80, %80, %80, %80, %80, %80, %80, %80 in 1 : vector<2x8x64xf32>, vector<2x8x64xf32>, vector<2x8x64xf32>, vector<2x8x64xf32>, vector<2x8x64xf32>, vector<2x8x64xf32>, vector<2x8x64xf32>, vector<2x8x64xf32> -> vector<2x64x64xf32>
    %102 = vector.broadcast %97 : vector<1x64x64xf32> to vector<2x64x64xf32>
    %103 = arith.mulf %101, %102 : vector<2x64x64xf32>
    %104 = arith.truncf %78 : vector<2x8x64xf32> to vector<2x8x64xbf16>
    %105 = arith.truncf %100 : vector<2x64x64xf32> to vector<2x64x64xbf16>
    %cst_42 = arith.constant dense<0.000000e+00> : vector<2x8x64xf32>
    %106 = tpu.matmul %104, %105, %cst_42 {dimension_numbers = #tpu.dot_dimension_numbers<[2], [2], [1], [1], [0, 0, 0, 1, 1, 1], [0], [0]>} : vector<2x8x64xbf16>, vector<2x64x64xbf16>, vector<2x8x64xf32> -> vector<2x8x64xf32>
    %cst_43 = arith.constant 0.353553385 : f32
    %107 = vector.broadcast %cst_43 : f32 to vector<2x8x64xf32>
    %108 = arith.mulf %106, %107 : vector<2x8x64xf32>
    %cst_44 = arith.constant dense<0xFF800000> : vector<2x8xf32>
    %109 = vector.multi_reduction <maximumf>, %108, %cst_44 [2] : vector<2x8x64xf32> to vector<2x8xf32>
    %110 = vector.shape_cast %109 : vector<2x8xf32> to vector<2x8x1xf32>
    %111 = vector.broadcast %110 : vector<2x8x1xf32> to vector<2x8x64xf32>
    %112 = arith.subf %108, %111 : vector<2x8x64xf32>
    %113 = math.exp %112 : vector<2x8x64xf32>
    %114 = tpu.iota {dimensions = array<i32: 0>} : vector<64x64xi32>
    %115 = arith.sitofp %114 : vector<64x64xi32> to vector<64x64xf32>
    %cst_45 = arith.constant 5.000000e-01 : f32
    %116 = vector.broadcast %cst_45 : f32 to vector<64x64xf32>
    %117 = arith.addf %115, %116 : vector<64x64xf32>
    %cst_46 = arith.constant 1.250000e-01 : f32
    %118 = vector.broadcast %cst_46 : f32 to vector<64x64xf32>
    %119 = arith.mulf %117, %118 : vector<64x64xf32>
    %120 = math.floor %119 : vector<64x64xf32>
    %121 = tpu.iota {dimensions = array<i32: 1>} : vector<64x64xi32>
    %122 = arith.sitofp %121 : vector<64x64xi32> to vector<64x64xf32>
    %cst_47 = arith.constant 5.000000e-01 : f32
    %123 = vector.broadcast %cst_47 : f32 to vector<64x64xf32>
    %124 = arith.addf %122, %123 : vector<64x64xf32>
    %cst_48 = arith.constant 1.250000e-01 : f32
    %125 = vector.broadcast %cst_48 : f32 to vector<64x64xf32>
    %126 = arith.mulf %124, %125 : vector<64x64xf32>
    %127 = math.floor %126 : vector<64x64xf32>
    %128 = arith.cmpf oeq, %120, %127 : vector<64x64xf32>
    %129 = arith.extui %128 : vector<64x64xi1> to vector<64x64xi32>
    %130 = arith.sitofp %129 : vector<64x64xi32> to vector<64x64xf32>
    %131 = vector.shape_cast %113 : vector<2x8x64xf32> to vector<16x64xf32>
    %cst_49 = arith.constant dense<0.000000e+00> : vector<16x64xf32>
    %132 = tpu.matmul %131, %130, %cst_49 {dimension_numbers = #tpu.dot_dimension_numbers<[1], [0], [0], [1], [0, 0, 1, 1], [], []>} : vector<16x64xf32>, vector<64x64xf32>, vector<16x64xf32> -> vector<16x64xf32>
    %133 = tpu.reciprocal %132 {approx = true} : vector<16x64xf32> -> vector<16x64xf32>
    %134 = arith.mulf %131, %133 : vector<16x64xf32>
    %135 = vector.shape_cast %134 : vector<16x64xf32> to vector<2x8x64xf32>
    %136 = arith.truncf %135 : vector<2x8x64xf32> to vector<2x8x64xbf16>
    %137 = arith.truncf %103 : vector<2x64x64xf32> to vector<2x64x64xbf16>
    %cst_50 = arith.constant dense<0.000000e+00> : vector<2x8x64xf32>
    %138 = tpu.matmul %136, %137, %cst_50 {dimension_numbers = #tpu.dot_dimension_numbers<[2], [1], [1], [2], [0, 0, 0, 1, 1, 2], [0], [0]>} : vector<2x8x64xbf16>, vector<2x64x64xbf16>, vector<2x8x64xf32> -> vector<2x8x64xf32>
    %139 = vector.shape_cast %138 : vector<2x8x64xf32> to vector<16x64xf32>
    %140 = arith.addf %21, %23 : vector<16x32xf32>
    %c0_51 = arith.constant 0 : index
    %c0_52 = arith.constant 0 : index
    %141 = vector.load %arg6[%c0_51, %c0_52] : memref<64x32xf32, #tpu.memory_space<vmem>>, vector<64x32xf32>
    %142 = arith.truncf %139 : vector<16x64xf32> to vector<16x64xbf16>
    %143 = arith.truncf %141 : vector<64x32xf32> to vector<64x32xbf16>
    %cst_53 = arith.constant dense<0.000000e+00> : vector<16x32xf32>
    %144 = tpu.matmul %142, %143, %cst_53 {dimension_numbers = #tpu.dot_dimension_numbers<[1], [0], [0], [1], [0, 0, 1, 1], [], []>} : vector<16x64xbf16>, vector<64x32xbf16>, vector<16x32xf32> -> vector<16x32xf32>
    %145 = arith.addf %140, %144 : vector<16x32xf32>
    %146 = vector.broadcast %1 : vector<1x32xf32> to vector<16x32xf32>
    %147 = arith.addf %145, %146 : vector<16x32xf32>
    %cst_54 = arith.constant dense<0.000000e+00> : vector<16xf32>
    %148 = vector.multi_reduction <add>, %147, %cst_54 [1] : vector<16x32xf32> to vector<16xf32>
    %149 = vector.shape_cast %148 : vector<16xf32> to vector<16x1xf32>
    %cst_55 = arith.constant 3.200000e+01 : f32
    %150 = vector.broadcast %cst_55 : f32 to vector<16x1xf32>
    %151 = arith.divf %149, %150 : vector<16x1xf32>
    %152 = vector.broadcast %151 : vector<16x1xf32> to vector<16x32xf32>
    %153 = arith.subf %147, %152 : vector<16x32xf32>
    %154 = arith.mulf %153, %153 : vector<16x32xf32>
    %cst_56 = arith.constant dense<0.000000e+00> : vector<16xf32>
    %155 = vector.multi_reduction <add>, %154, %cst_56 [1] : vector<16x32xf32> to vector<16xf32>
    %156 = vector.shape_cast %155 : vector<16xf32> to vector<16x1xf32>
    %cst_57 = arith.constant 3.200000e+01 : f32
    %157 = vector.broadcast %cst_57 : f32 to vector<16x1xf32>
    %158 = arith.divf %156, %157 : vector<16x1xf32>
    %159 = vector.broadcast %151 : vector<16x1xf32> to vector<16x32xf32>
    %160 = arith.subf %147, %159 : vector<16x32xf32>
    %cst_58 = arith.constant 9.99999996E-13 : f32
    %161 = vector.broadcast %cst_58 : f32 to vector<16x1xf32>
    %162 = arith.addf %158, %161 : vector<16x1xf32>
    %163 = math.rsqrt %162 : vector<16x1xf32>
    %164 = vector.broadcast %163 : vector<16x1xf32> to vector<16x32xf32>
    %165 = arith.mulf %160, %164 : vector<16x32xf32>
    %166 = vector.broadcast %7 : vector<1x32xf32> to vector<16x32xf32>
    %167 = arith.mulf %165, %166 : vector<16x32xf32>
    %168 = vector.broadcast %11 : vector<1x32xf32> to vector<16x32xf32>
    %169 = arith.addf %167, %168 : vector<16x32xf32>
    %c0_59 = arith.constant 0 : index
    %c0_60 = arith.constant 0 : index
    %170 = vector.load %arg7[%c0_59, %c0_60] : memref<32x128xf32, #tpu.memory_space<vmem>>, vector<32x32xf32>
    %171 = arith.truncf %169 : vector<16x32xf32> to vector<16x32xbf16>
    %172 = arith.truncf %170 : vector<32x32xf32> to vector<32x32xbf16>
    %cst_61 = arith.constant dense<0.000000e+00> : vector<16x32xf32>
    %173 = tpu.matmul %171, %172, %cst_61 {dimension_numbers = #tpu.dot_dimension_numbers<[1], [0], [0], [1], [0, 0, 1, 1], [], []>} : vector<16x32xbf16>, vector<32x32xbf16>, vector<16x32xf32> -> vector<16x32xf32>
    %174 = vector.broadcast %2 : vector<1x32xf32> to vector<16x32xf32>
    %175 = arith.addf %173, %174 : vector<16x32xf32>
    %c0_62 = arith.constant 0 : index
    %c32 = arith.constant 32 : index
    %176 = vector.load %arg7[%c0_62, %c32] : memref<32x128xf32, #tpu.memory_space<vmem>>, vector<32x64xf32>
    %177 = arith.truncf %18 : vector<32x32xf32> to vector<32x32xbf16>
    %178 = arith.truncf %176 : vector<32x64xf32> to vector<32x64xbf16>
    %cst_63 = arith.constant dense<0.000000e+00> : vector<32x64xf32>
    %179 = tpu.matmul %177, %178, %cst_63 {dimension_numbers = #tpu.dot_dimension_numbers<[1], [0], [0], [1], [0, 0, 1, 1], [], []>} : vector<32x32xbf16>, vector<32x64xbf16>, vector<32x64xf32> -> vector<32x64xf32>
    %180 = vector.broadcast %3 : vector<1x64xf32> to vector<32x64xf32>
    %181 = arith.addf %179, %180 : vector<32x64xf32>
    %182 = vector.extract_strided_slice %181 {offsets = [0, 0], sizes = [32, 32], strides = [1, 1]} : vector<32x64xf32> to vector<32x32xf32>
    %183 = vector.extract_strided_slice %181 {offsets = [0, 32], sizes = [32, 32], strides = [1, 1]} : vector<32x64xf32> to vector<32x32xf32>
    %184 = vector.shape_cast %175 : vector<16x32xf32> to vector<2x8x32xf32>
    %185 = vector.shape_cast %182 : vector<32x32xf32> to vector<2x16x32xf32>
    %186 = vector.shape_cast %183 : vector<32x32xf32> to vector<2x16x32xf32>
    %187 = tpu.iota {dimensions = array<i32: 1>} : vector<1x64x32xi32>
    %188 = arith.sitofp %187 : vector<1x64x32xi32> to vector<1x64x32xf32>
    %cst_64 = arith.constant 5.000000e-01 : f32
    %189 = vector.broadcast %cst_64 : f32 to vector<1x64x32xf32>
    %190 = arith.addf %188, %189 : vector<1x64x32xf32>
    %cst_65 = arith.constant 6.250000e-02 : f32
    %191 = vector.broadcast %cst_65 : f32 to vector<1x64x32xf32>
    %192 = arith.mulf %190, %191 : vector<1x64x32xf32>
    %193 = math.floor %192 : vector<1x64x32xf32>
    %194 = tpu.iota {dimensions = array<i32: 2>} : vector<1x64x32xi32>
    %195 = arith.sitofp %194 : vector<1x64x32xi32> to vector<1x64x32xf32>
    %cst_66 = arith.constant 5.000000e-01 : f32
    %196 = vector.broadcast %cst_66 : f32 to vector<1x64x32xf32>
    %197 = arith.addf %195, %196 : vector<1x64x32xf32>
    %cst_67 = arith.constant 1.250000e-01 : f32
    %198 = vector.broadcast %cst_67 : f32 to vector<1x64x32xf32>
    %199 = arith.mulf %197, %198 : vector<1x64x32xf32>
    %200 = math.floor %199 : vector<1x64x32xf32>
    %201 = arith.cmpf oeq, %193, %200 : vector<1x64x32xf32>
    %202 = arith.extui %201 : vector<1x64x32xi1> to vector<1x64x32xi32>
    %203 = arith.sitofp %202 : vector<1x64x32xi32> to vector<1x64x32xf32>
    %204 = tpu.concatenate %185, %185, %185, %185 in 1 : vector<2x16x32xf32>, vector<2x16x32xf32>, vector<2x16x32xf32>, vector<2x16x32xf32> -> vector<2x64x32xf32>
    %205 = vector.broadcast %203 : vector<1x64x32xf32> to vector<2x64x32xf32>
    %206 = arith.mulf %204, %205 : vector<2x64x32xf32>
    %207 = tpu.concatenate %186, %186, %186, %186 in 1 : vector<2x16x32xf32>, vector<2x16x32xf32>, vector<2x16x32xf32>, vector<2x16x32xf32> -> vector<2x64x32xf32>
    %208 = vector.broadcast %203 : vector<1x64x32xf32> to vector<2x64x32xf32>
    %209 = arith.mulf %207, %208 : vector<2x64x32xf32>
    %210 = arith.truncf %184 : vector<2x8x32xf32> to vector<2x8x32xbf16>
    %211 = arith.truncf %206 : vector<2x64x32xf32> to vector<2x64x32xbf16>
    %cst_68 = arith.constant dense<0.000000e+00> : vector<2x8x64xf32>
    %212 = tpu.matmul %210, %211, %cst_68 {dimension_numbers = #tpu.dot_dimension_numbers<[2], [2], [1], [1], [0, 0, 0, 1, 1, 1], [0], [0]>} : vector<2x8x32xbf16>, vector<2x64x32xbf16>, vector<2x8x64xf32> -> vector<2x8x64xf32>
    %cst_69 = arith.constant 0.353553385 : f32
    %213 = vector.broadcast %cst_69 : f32 to vector<2x8x64xf32>
    %214 = arith.mulf %212, %213 : vector<2x8x64xf32>
    %cst_70 = arith.constant 1.000000e+00 : f32
    %215 = vector.broadcast %cst_70 : f32 to vector<2x1x64xf32>
    %216 = arith.subf %19, %215 : vector<2x1x64xf32>
    %cst_71 = arith.constant 1.000000e+30 : f32
    %217 = vector.broadcast %cst_71 : f32 to vector<2x1x64xf32>
    %218 = arith.mulf %216, %217 : vector<2x1x64xf32>
    %219 = vector.broadcast %218 : vector<2x1x64xf32> to vector<2x8x64xf32>
    %220 = arith.addf %214, %219 : vector<2x8x64xf32>
    %cst_72 = arith.constant dense<0xFF800000> : vector<2x8xf32>
    %221 = vector.multi_reduction <maximumf>, %220, %cst_72 [2] : vector<2x8x64xf32> to vector<2x8xf32>
    %222 = vector.shape_cast %221 : vector<2x8xf32> to vector<2x8x1xf32>
    %223 = vector.broadcast %222 : vector<2x8x1xf32> to vector<2x8x64xf32>
    %224 = arith.subf %220, %223 : vector<2x8x64xf32>
    %225 = math.exp %224 : vector<2x8x64xf32>
    %226 = tpu.iota {dimensions = array<i32: 0>} : vector<64x64xi32>
    %227 = arith.sitofp %226 : vector<64x64xi32> to vector<64x64xf32>
    %cst_73 = arith.constant 5.000000e-01 : f32
    %228 = vector.broadcast %cst_73 : f32 to vector<64x64xf32>
    %229 = arith.addf %227, %228 : vector<64x64xf32>
    %cst_74 = arith.constant 6.250000e-02 : f32
    %230 = vector.broadcast %cst_74 : f32 to vector<64x64xf32>
    %231 = arith.mulf %229, %230 : vector<64x64xf32>
    %232 = math.floor %231 : vector<64x64xf32>
    %233 = tpu.iota {dimensions = array<i32: 1>} : vector<64x64xi32>
    %234 = arith.sitofp %233 : vector<64x64xi32> to vector<64x64xf32>
    %cst_75 = arith.constant 5.000000e-01 : f32
    %235 = vector.broadcast %cst_75 : f32 to vector<64x64xf32>
    %236 = arith.addf %234, %235 : vector<64x64xf32>
    %cst_76 = arith.constant 6.250000e-02 : f32
    %237 = vector.broadcast %cst_76 : f32 to vector<64x64xf32>
    %238 = arith.mulf %236, %237 : vector<64x64xf32>
    %239 = math.floor %238 : vector<64x64xf32>
    %240 = arith.cmpf oeq, %232, %239 : vector<64x64xf32>
    %241 = arith.extui %240 : vector<64x64xi1> to vector<64x64xi32>
    %242 = arith.sitofp %241 : vector<64x64xi32> to vector<64x64xf32>
    %243 = vector.shape_cast %225 : vector<2x8x64xf32> to vector<16x64xf32>
    %cst_77 = arith.constant dense<0.000000e+00> : vector<16x64xf32>
    %244 = tpu.matmul %243, %242, %cst_77 {dimension_numbers = #tpu.dot_dimension_numbers<[1], [0], [0], [1], [0, 0, 1, 1], [], []>} : vector<16x64xf32>, vector<64x64xf32>, vector<16x64xf32> -> vector<16x64xf32>
    %245 = tpu.reciprocal %244 {approx = true} : vector<16x64xf32> -> vector<16x64xf32>
    %246 = arith.mulf %243, %245 : vector<16x64xf32>
    %247 = vector.shape_cast %246 : vector<16x64xf32> to vector<2x8x64xf32>
    %248 = vector.broadcast %19 : vector<2x1x64xf32> to vector<2x8x64xf32>
    %249 = arith.mulf %247, %248 : vector<2x8x64xf32>
    %250 = arith.truncf %249 : vector<2x8x64xf32> to vector<2x8x64xbf16>
    %251 = arith.truncf %209 : vector<2x64x32xf32> to vector<2x64x32xbf16>
    %cst_78 = arith.constant dense<0.000000e+00> : vector<2x8x32xf32>
    %252 = tpu.matmul %250, %251, %cst_78 {dimension_numbers = #tpu.dot_dimension_numbers<[2], [1], [1], [2], [0, 0, 0, 1, 1, 2], [0], [0]>} : vector<2x8x64xbf16>, vector<2x64x32xbf16>, vector<2x8x32xf32> -> vector<2x8x32xf32>
    %253 = vector.shape_cast %252 : vector<2x8x32xf32> to vector<16x32xf32>
    %c0_79 = arith.constant 0 : index
    %c96 = arith.constant 96 : index
    %254 = vector.load %arg7[%c0_79, %c96] : memref<32x128xf32, #tpu.memory_space<vmem>>, vector<32x32xf32>
    %255 = arith.truncf %253 : vector<16x32xf32> to vector<16x32xbf16>
    %256 = arith.truncf %254 : vector<32x32xf32> to vector<32x32xbf16>
    %cst_80 = arith.constant dense<0.000000e+00> : vector<16x32xf32>
    %257 = tpu.matmul %255, %256, %cst_80 {dimension_numbers = #tpu.dot_dimension_numbers<[1], [0], [0], [1], [0, 0, 1, 1], [], []>} : vector<16x32xbf16>, vector<32x32xbf16>, vector<16x32xf32> -> vector<16x32xf32>
    %258 = arith.addf %147, %257 : vector<16x32xf32>
    %259 = vector.broadcast %4 : vector<1x32xf32> to vector<16x32xf32>
    %260 = arith.addf %258, %259 : vector<16x32xf32>
    %cst_81 = arith.constant dense<0.000000e+00> : vector<16xf32>
    %261 = vector.multi_reduction <add>, %260, %cst_81 [1] : vector<16x32xf32> to vector<16xf32>
    %262 = vector.shape_cast %261 : vector<16xf32> to vector<16x1xf32>
    %cst_82 = arith.constant 3.200000e+01 : f32
    %263 = vector.broadcast %cst_82 : f32 to vector<16x1xf32>
    %264 = arith.divf %262, %263 : vector<16x1xf32>
    %265 = vector.broadcast %264 : vector<16x1xf32> to vector<16x32xf32>
    %266 = arith.subf %260, %265 : vector<16x32xf32>
    %267 = arith.mulf %266, %266 : vector<16x32xf32>
    %cst_83 = arith.constant dense<0.000000e+00> : vector<16xf32>
    %268 = vector.multi_reduction <add>, %267, %cst_83 [1] : vector<16x32xf32> to vector<16xf32>
    %269 = vector.shape_cast %268 : vector<16xf32> to vector<16x1xf32>
    %cst_84 = arith.constant 3.200000e+01 : f32
    %270 = vector.broadcast %cst_84 : f32 to vector<16x1xf32>
    %271 = arith.divf %269, %270 : vector<16x1xf32>
    %272 = vector.broadcast %264 : vector<16x1xf32> to vector<16x32xf32>
    %273 = arith.subf %260, %272 : vector<16x32xf32>
    %cst_85 = arith.constant 9.99999996E-13 : f32
    %274 = vector.broadcast %cst_85 : f32 to vector<16x1xf32>
    %275 = arith.addf %271, %274 : vector<16x1xf32>
    %276 = math.rsqrt %275 : vector<16x1xf32>
    %277 = vector.broadcast %276 : vector<16x1xf32> to vector<16x32xf32>
    %278 = arith.mulf %273, %277 : vector<16x32xf32>
    %279 = vector.broadcast %8 : vector<1x32xf32> to vector<16x32xf32>
    %280 = arith.mulf %278, %279 : vector<16x32xf32>
    %281 = vector.broadcast %12 : vector<1x32xf32> to vector<16x32xf32>
    %282 = arith.addf %280, %281 : vector<16x32xf32>
    %c0_86 = arith.constant 0 : index
    %c0_87 = arith.constant 0 : index
    %283 = vector.load %arg8[%c0_86, %c0_87] : memref<32x64xf32, #tpu.memory_space<vmem>>, vector<32x64xf32>
    %284 = arith.truncf %282 : vector<16x32xf32> to vector<16x32xbf16>
    %285 = arith.truncf %283 : vector<32x64xf32> to vector<32x64xbf16>
    %cst_88 = arith.constant dense<0.000000e+00> : vector<16x64xf32>
    %286 = tpu.matmul %284, %285, %cst_88 {dimension_numbers = #tpu.dot_dimension_numbers<[1], [0], [0], [1], [0, 0, 1, 1], [], []>} : vector<16x32xbf16>, vector<32x64xbf16>, vector<16x64xf32> -> vector<16x64xf32>
    %287 = vector.broadcast %13 : vector<1x64xf32> to vector<16x64xf32>
    %288 = arith.addf %286, %287 : vector<16x64xf32>
    %cst_89 = arith.constant 0.000000e+00 : f32
    %289 = vector.broadcast %cst_89 : f32 to vector<16x64xf32>
    %290 = arith.maximumf %288, %289 : vector<16x64xf32>
    %c0_90 = arith.constant 0 : index
    %c0_91 = arith.constant 0 : index
    %291 = vector.load %arg9[%c0_90, %c0_91] : memref<64x32xf32, #tpu.memory_space<vmem>>, vector<64x32xf32>
    %292 = arith.truncf %290 : vector<16x64xf32> to vector<16x64xbf16>
    %293 = arith.truncf %291 : vector<64x32xf32> to vector<64x32xbf16>
    %cst_92 = arith.constant dense<0.000000e+00> : vector<16x32xf32>
    %294 = tpu.matmul %292, %293, %cst_92 {dimension_numbers = #tpu.dot_dimension_numbers<[1], [0], [0], [1], [0, 0, 1, 1], [], []>} : vector<16x64xbf16>, vector<64x32xbf16>, vector<16x32xf32> -> vector<16x32xf32>
    %295 = arith.addf %260, %294 : vector<16x32xf32>
    %296 = vector.broadcast %14 : vector<1x32xf32> to vector<16x32xf32>
    %297 = arith.addf %295, %296 : vector<16x32xf32>
    %c0_93 = arith.constant 0 : index
    %c0_94 = arith.constant 0 : index
    %298 = vector.load %arg11[%c0_93, %c0_94] : memref<16x32xf32, #tpu.memory_space<vmem>>, vector<16x32xf32>
    tpu.vector_store %arg11[%c0_93, %c0_94], %297 {strides = array<i32>} : memref<16x32xf32, #tpu.memory_space<vmem>>, vector<16x32xf32>,
    return
  }
  func.func @transform_0(%arg0: i32) -> (i32, i32) {
    %c0_i32 = arith.constant 0 : i32
    %c0_i32_0 = arith.constant 0 : i32
    return %arg0, %c0_i32 : i32, i32
  }
  func.func @transform_1(%arg0: i32) -> (i32, i32) {
    %c0_i32 = arith.constant 0 : i32
    %c0_i32_0 = arith.constant 0 : i32
    return %arg0, %c0_i32 : i32, i32
  }
  func.func @transform_2(%arg0: i32) -> (i32, i32) {
    %c0_i32 = arith.constant 0 : i32
    %c0_i32_0 = arith.constant 0 : i32
    return %arg0, %c0_i32 : i32, i32
  }
  func.func @transform_3(%arg0: i32) -> (i32, i32, i32) {
    %c0_i32 = arith.constant 0 : i32
    %c0_i32_0 = arith.constant 0 : i32
    %c0_i32_1 = arith.constant 0 : i32
    return %arg0, %c0_i32, %c0_i32_0 : i32, i32, i32
  }
  func.func @transform_4(%arg0: i32) -> (i32, i32) {
    %c0_i32 = arith.constant 0 : i32
    %c0_i32_0 = arith.constant 0 : i32
    %c0_i32_1 = arith.constant 0 : i32
    return %c0_i32, %c0_i32_0 : i32, i32
  }
  func.func @transform_5(%arg0: i32) -> (i32, i32) {
    %c0_i32 = arith.constant 0 : i32
    %c0_i32_0 = arith.constant 0 : i32
    %c0_i32_1 = arith.constant 0 : i32
    return %c0_i32, %c0_i32_0 : i32, i32
  }
  func.func @transform_6(%arg0: i32) -> (i32, i32) {
    %c0_i32 = arith.constant 0 : i32
    %c0_i32_0 = arith.constant 0 : i32
    %c0_i32_1 = arith.constant 0 : i32
    return %c0_i32, %c0_i32_0 : i32, i32
  }
  func.func @transform_7(%arg0: i32) -> (i32, i32) {
    %c0_i32 = arith.constant 0 : i32
    %c0_i32_0 = arith.constant 0 : i32
    %c0_i32_1 = arith.constant 0 : i32
    return %c0_i32, %c0_i32_0 : i32, i32
  }
  func.func @transform_8(%arg0: i32) -> (i32, i32) {
    %c0_i32 = arith.constant 0 : i32
    %c0_i32_0 = arith.constant 0 : i32
    %c0_i32_1 = arith.constant 0 : i32
    return %c0_i32, %c0_i32_0 : i32, i32
  }
  func.func @transform_9(%arg0: i32) -> (i32, i32) {
    %c0_i32 = arith.constant 0 : i32
    %c0_i32_0 = arith.constant 0 : i32
    %c0_i32_1 = arith.constant 0 : i32
    return %c0_i32, %c0_i32_0 : i32, i32
  }
  func.func @transform_10(%arg0: i32) -> (i32, i32) {
    %c0_i32 = arith.constant 0 : i32
    %c0_i32_0 = arith.constant 0 : i32
    return %arg0, %c0_i32 : i32, i32
  }
}

</mosaic_0001>

<bundles_post_ra>
// kernel: tpu_custom_call.1
= control target key start
LH: loop header
LB: loop body
LE: loop exit
PB: predicated region body
PF: predicated region fallthrough
CT: control target
= control target key end

     0   :  { %15 = vsyncpa [#allocation3], 0  ;;  %s3186_s0 = inlined_call_operand.vmem [shape: f32[16,2], index: 0, kind: input, shape index: {}]   ;;  %s3187_s1 = inlined_call_operand.hbm [shape: f32[16,32], index: 1, kind: input, shape index: {}]   ;;  %s3188_s2 = inlined_call_operand.vmem [shape: f32[32,32], index: 2, kind: input, shape index: {}]   ;;  %s3189_s3 = inlined_call_operand.vmem [shape: f32[2,1,64], index: 3, kind: input, shape index: {}]   ;;  %s3190_s4 = inlined_call_operand.vmem [shape: f32[64,192], index: 4, kind: input, shape index: {}]   ;;  %s3191_s5 = inlined_call_operand.vmem [shape: f32[64,32], index: 5, kind: input, shape index: {}]   ;;  %s3192_s6 = inlined_call_operand.hbm [shape: f32[32,128], index: 6, kind: input, shape index: {}]   ;;  %s3193_s7 = inlined_call_operand.hbm [shape: f32[32,64], index: 7, kind: input, shape index: {}]   ;;  %s3194_s8 = inlined_call_operand.vmem [shape: f32[64,32], index: 8, kind: input, shape index: {}]   ;;  %s3195_s9 = inlined_call_operand.hbm [shape: f32[16,192], index: 9, kind: input, shape index: {}]   ;;  %s3196_s10 = inlined_call_operand.hbm [shape: f32[16,32], index: 10, kind: output, shape index: {}]  }
   0x1   :  { %16 = vsyncpa [#allocation6], 0 }
   0x2   :  { %17 = vsyncpa [#allocation9], 0 }
   0x3   :  { %18 = vsyncpa [#allocation4], 0  ;;  %s2287_s13 = smov [#allocation5]   ;;  %s2288_s15 = smov [#allocation2]  }
   0x4   :  { %s46_s14 = sshll.u32 %s2287_s13, 4  ;;  %s26_s16 = sshll.u32 %s2288_s15, 4  ;;  %s47_s14 = int_to_ptr.vmem [resolvable:$true] %s46_s14  ;;  %s2359_s16 = int_to_ptr.vmem [resolvable:$true] %s26_s16 }
   0x5   :  { %s2169_s19 = scalar_lea.hbm %s3192_s6, 512 }
   0x6   :  { %p2170_p0 = scmp.ne.s32.totalorder %s3192_s6, %s2169_s19  ;;  %p2173_p1 = scmp.lt.u32.totalorder %s2169_s19, %s3192_s6 }
   0x8   :  { %p2175_p2 = pnand %p2173_p1, %p2170_p0 }
   0xa   :  { %2178 = shalt.err (!%p2175_p2)
}
   0xb   :  { %s2179_s24 = scalar_lea.vmem %s47_s14, 512  ;;  %p2184_p4 = scmp.lt.s32.totalorder %s47_s14, %s47_s14 }
   0xc   :  { %p2180_p3 = scmp.ne.s32.totalorder %s47_s14, %s2179_s24  ;;  %p2185_p5 = scmp.lt.s32.totalorder %s2179_s24, %s2179_s24 }
   0xe   :  { %p2186_p6 = por %p2185_p5, %p2184_p4 }
  0x10   :  { %p2187_p7 = pnand %p2186_p6, %p2180_p3 }
  0x12   :  { %2190 = shalt.err (!%p2187_p7)
}
  0x13   :  { %s2289_s25 = smov 128   ;;  %s2290_s26 = smov 8  }
  0x14   :  { %52 = dma.hbm_to_vmem [thread:$0]  %s3192_s6, 512, %s47_s14, [#allocation6], %s2289_s25, %s2289_s25, %s2290_s26  }
  0x15   :  { %s2191_s11 = scalar_lea.hbm %s3187_s1, 256 }
  0x16   :  { %p2192_p8 = scmp.ne.s32.totalorder %s3187_s1, %s2191_s11  ;;  %p2195_p9 = scmp.lt.u32.totalorder %s2191_s11, %s3187_s1 }
  0x18   :  { %p2197_p10 = pnand %p2195_p9, %p2192_p8 }
  0x1a   :  { %2200 = shalt.err (!%p2197_p10)
}
  0x1b   :  { %s2201_s18 = scalar_lea.vmem %s2359_s16, 256  ;;  %p2206_p12 = scmp.lt.s32.totalorder %s2359_s16, %s2359_s16 }
  0x1c   :  { %p2202_p11 = scmp.ne.s32.totalorder %s2359_s16, %s2201_s18  ;;  %p2207_p13 = scmp.lt.s32.totalorder %s2201_s18, %s2201_s18 }
  0x1e   :  { %p2208_p0 = por %p2207_p13, %p2206_p12 }
  0x20   :  { %p2209_p1 = pnand %p2208_p0, %p2202_p11 }
  0x22   :  { %2212 = shalt.err (!%p2209_p1)
}
  0x23   :  { %32 = dma.hbm_to_vmem [thread:$0]  %s3187_s1, 256, %s2359_s16, [#allocation3], %s2289_s25, %s2289_s25, %s2290_s26  }
  0x24   :  { %s2291_s19 = smov [#allocation7]   ;;  %s2292_s21 = smov [#allocation8]  }
  0x25   :  { %s58_s20 = sshll.u32 %s2291_s19, 4  ;;  %s72_s22 = sshll.u32 %s2292_s21, 4  ;;  %s59_s20 = int_to_ptr.vmem [resolvable:$true] %s58_s20  ;;  %s2396_s22 = int_to_ptr.vmem [resolvable:$true] %s72_s22 }
  0x26   :  { %s2213_s27 = scalar_lea.hbm %s3193_s7, 512 }
  0x27   :  { %p2214_p2 = scmp.ne.s32.totalorder %s3193_s7, %s2213_s27  ;;  %p2217_p3 = scmp.lt.u32.totalorder %s2213_s27, %s3193_s7 }
  0x29   :  { %p2219_p4 = pnand %p2217_p3, %p2214_p2 }
  0x2b   :  { %2222 = shalt.err (!%p2219_p4)
}
  0x2c   :  { %s2223_s1 = scalar_lea.vmem %s59_s20, 512  ;;  %p2228_p6 = scmp.lt.s32.totalorder %s59_s20, %s59_s20 }
  0x2d   :  { %p2224_p5 = scmp.ne.s32.totalorder %s59_s20, %s2223_s1  ;;  %p2229_p7 = scmp.lt.s32.totalorder %s2223_s1, %s2223_s1 }
  0x2f   :  { %p2230_p8 = por %p2229_p7, %p2228_p6 }
  0x31   :  { %p2231_p9 = pnand %p2230_p8, %p2224_p5 }
  0x33   :  { %2234 = shalt.err (!%p2231_p9)
}
  0x34   :  { %64 = dma.hbm_to_vmem [thread:$0]  %s3193_s7, 512, %s59_s20, [#allocation6], %s2289_s25, %s2289_s25, %s2290_s26  }
  0x35   :  { %s2235_s17 = scalar_lea.hbm %s3195_s9, 512 }
  0x36   :  { %p2236_p10 = scmp.ne.s32.totalorder %s3195_s9, %s2235_s17  ;;  %p2239_p11 = scmp.lt.u32.totalorder %s2235_s17, %s3195_s9 }
  0x38   :  { %p2241_p12 = pnand %p2239_p11, %p2236_p10 }
  0x3a   :  { %2244 = shalt.err (!%p2241_p12)
}
  0x3b   :  { %s2245_s21 = scalar_lea.vmem %s2396_s22, 512  ;;  %p2250_p0 = scmp.lt.s32.totalorder %s2396_s22, %s2396_s22 }
  0x3c   :  { %p2246_p13 = scmp.ne.s32.totalorder %s2396_s22, %s2245_s21  ;;  %p2251_p1 = scmp.lt.s32.totalorder %s2245_s21, %s2245_s21 }
  0x3e   :  { %p2252_p2 = por %p2251_p1, %p2250_p0 }
  0x40   :  { %p2253_p3 = pnand %p2252_p2, %p2246_p13 }
  0x42   :  { %2256 = shalt.err (!%p2253_p3)
}
  0x43   :  { %s2293_s7 = smov 256   ;;  %s2294_s20 = smov 16  }
  0x44   :  { %78 = dma.hbm_to_vmem [thread:$0]  %s3195_s9, 512, %s2396_s22, [#allocation9], %s2293_s7, %s2293_s7, %s2294_s20  }
  0x45   :  { %2279 = dma.done.wait [#allocation3], 256  }
  0x46   :  { %2280 = vsyncadd [#allocation3], 4294967040 }
  0x47   :  { %2281 = dma.done.wait [#allocation6], 1024  }
  0x48   :  { %2282 = vsyncadd [#allocation6], 4294966272 }
  0x49   :  { %2283 = dma.done.wait [#allocation9], 512  }
  0x4a   :  { %2284 = vsyncadd [#allocation9], 4294966784  ;;  %v2295_v0 = vmov 1   ;;  %v2296_v1 = vmov 0   ;;  %v109_v2 = vld [vmem:[%s3186_s0] sm:$0xff]  ;;  %v110_v3 = vld [vmem:[%s3186_s0 + $0x8] sm:$0xff] }
  0x4b   :  { %2090 = vset.pattern.permute.xlu0 %v2295_v0  ;;  %2091 = vset.pattern.permute.xlu1 %v2296_v1  ;;  %v107_v4 = vld [vmem:[#allocation2] sm:$0xff]  ;;  %vm139_vm0 = vcmask 261120   ;;  %v108_v8 = vld [vmem:[#allocation2 + $0x8] sm:$0xff]  ;;  %v212_v38 = vld [vmem:[%s3190_s4 + $0x8] sm:$0xff]  ;;  %s2299_s17 = smov 64   ;;  %vm247_vm9 = vcmask 523264  }
  0x4c   :  { %283 = vmatprep.mubr.bf16.mxu0 %v2296_v1  ;;  %119 = vperm.xlu1 %2091, %v109_v2   ;;  %v214_v39 = vld [vmem:[%s3190_s4 + $0x18] sm:$0xff]  ;;  %v211_v40 = vld [vmem:[%s3190_s4] sm:$0xff]  ;;  %v213_v42 = vld [vmem:[%s3190_s4 + $0x10] sm:$0xff]  ;;  %vm2300_vm10 = vmmov 0  }
  0x4d   :  { %130 = vperm.xlu0 %2090, %v109_v2   ;;  %v229_v41 = vpack.c.bf16 %v214_v39, %v212_v38  ;;  %v216_v43 = vld [vmem:[%s3190_s4 + $0x28] sm:$0xff]  ;;  %v218_v44 = vld [vmem:[%s3190_s4 + $0x38] sm:$0xff]  ;;  %v228_v45 = vpack.c.bf16 %v213_v42, %v211_v40  ;;  %v215_v47 = vld [vmem:[%s3190_s4 + $0x20] sm:$0xff] }
  0x4e   :  { %v231_v46 = vpack.c.bf16 %v218_v44, %v216_v43  ;;  %v217_v48 = vld [vmem:[%s3190_s4 + $0x30] sm:$0xff]  ;;  %v220_v49 = vld [vmem:[%s3190_s4 + $0x48] sm:$0xff]  ;;  %v222_v50 = vld [vmem:[%s3190_s4 + $0x58] sm:$0xff] }
  0x4f   :  { %251 = vmatprep.subr.bf16.mxu0 %v229_v41  ;;  %v230_v51 = vpack.c.bf16 %v217_v48, %v215_v47  ;;  %v233_v52 = vpack.c.bf16 %v222_v50, %v220_v49  ;;  %v219_v53 = vld [vmem:[%s3190_s4 + $0x40] sm:$0xff]  ;;  %v221_v54 = vld [vmem:[%s3190_s4 + $0x50] sm:$0xff]  ;;  %v224_v62 = vld [vmem:[%s3190_s4 + $0x68] sm:$0xff] }
  0x50   :  { %124 = vperm.xlu1 %2091, %v110_v3   ;;  %252 = vmatpush1.bf16.msra.mxu0 %v228_v45  ;;  %v232_v55 = vpack.c.bf16 %v221_v54, %v219_v53  ;;  %v226_v63 = vld [vmem:[%s3190_s4 + $0x78] sm:$0xff]  ;;  %v223_v2 = vld [vmem:[%s3190_s4 + $0x60] sm:$0xff] }
  0x51   :  { %134 = vperm.xlu0 %2090, %v110_v3   ;;  %253 = vmatprep.subr.bf16.mxu0 %v231_v46  ;;  %v235_v1 = vpack.c.bf16 %v226_v63, %v224_v62  ;;  %v225_v3 = vld [vmem:[%s3190_s4 + $0x70] sm:$0xff]  ;;  %s2298_s4 = smov 32  }
  0x54   :  { %254 = vmatpush1.bf16.msra.mxu0 %v230_v51 }
  0x55   :  { %255 = vmatprep.subr.bf16.mxu0 %v233_v52 }
  0x58   :  { %256 = vmatpush1.bf16.msra.mxu0 %v232_v55 }
  0x59   :  { %257 = vmatprep.subr.bf16.mxu0 %v235_v1 }
  0xcb   :  { %v120_v5 = vpop.permute.xlu1 %119 }
  0xcc   :  { %v131_v6 = vpop.permute.xlu0 %130  ;;  %v2438_v9 = vmul.f32 %v120_v5, %v107_v4  ;;  %v234_v5 = vpack.c.bf16 %v225_v3, %v223_v2 }
  0xcd   :  { %v2436_v7 = vmul.f32 %v131_v6, %v107_v4  ;;  %v98_v6 = vld [vmem:[#allocation8 + $0x6] ss:$0 sm:$0xff] }
  0xce   :  { %v140_v14 = vsel %vm139_vm0, %v2438_v9, 0.0  ;;  %258 = vmatpush1.bf16.msra.mxu0 %v234_v5 }
  0xcf   :  { %v171_v10 = vsel %vm139_vm0, %v2436_v7, 0.0  ;;  %v125_v11 = vpop.permute.xlu1 %124 }
  0xd0   :  { %v135_v12 = vpop.permute.xlu0 %134  ;;  %172 = vadd.xlane.f32.xlu0 %v171_v10  ;;  %v2446_v15 = vmul.f32 %v125_v11, %v108_v8  ;;  %v102_v11 = vld [vmem:[#allocation8 + $0x12] ss:$0 sm:$0xff] }
  0xd1   :  { %v2442_v13 = vmul.f32 %v135_v12, %v108_v8 }
  0xd2   :  { %v143_v17 = vsel %vm139_vm0, %v2446_v15, 0.0 }
  0xd3   :  { %v174_v16 = vsel %vm139_vm0, %v2442_v13, 0.0 }
  0xd4   :  { %175 = vadd.xlane.f32.xlu1 %v174_v16  ;;  %141 = vadd.xlane.f32.xlu0 %v140_v14  ;;  %v237_v14 = vlaneseq  ;;  %v2297_v16 = vmov 0.0  }
  0xd5   :  { %1851 = vmatprep.subr.bf16.mxu1 %v2297_v16  ;;  %1863 = vmatprep.subr.bf16.mxu0 %v2297_v16 }
  0xd6   :  { %1859 = vmatprep.mubr.msk.bf16.mxu1 %vm2300_vm10, %v2297_v16 }
  0xd8   :  { %144 = vadd.xlane.f32.xlu0 %v143_v17 }
 0x15d   :  { %v173_v18 = vpop.xlane.xlu0 %172 }
 0x15e   :  { %v177_v19 = vmul.f32 0.03125, %v173_v18  ;;  %v2518_v18 = vshrl.u32 %v237_v14, 7 }
 0x160   :  { %v179_v20 = vsub.f32 %v2436_v7, %v177_v19  ;;  %v336_v19 = vand.u32 127, %v237_v14  ;;  %v299_v44 = vadd.s32 32, %v2518_v18  ;;  %v300_v52 = vadd.s32 40, %v2518_v18 }
 0x161   :  { %v176_v21 = vpop.xlane.xlu1 %175  ;;  %v142_v22 = vpop.xlane.xlu0 %141 }
 0x162   :  { %v178_v23 = vmul.f32 0.03125, %v176_v21  ;;  %v147_v24 = vmul.f32 0.03125, %v142_v22  ;;  %v181_v25 = vmul.f32 %v179_v20, %v179_v20  ;;  %v296_v22 = vadd.s32 8, %v2518_v18 }
 0x163   :  { %v308_v63 = vcvt.s32.f32 %v300_v52 }
 0x164   :  { %v180_v26 = vsub.f32 %v2442_v13, %v178_v23  ;;  %v2455_v27 = vsub.f32 %v2438_v9, %v147_v24  ;;  %v183_v28 = vsel %vm139_vm0, %v181_v25, 0.0  ;;  %v303_v23 = vcvt.s32.f32 %v2518_v18 }
 0x165   :  { %184 = vadd.xlane.f32.xlu1 %v183_v28  ;;  %v145_v29 = vpop.xlane.xlu0 %144  ;;  %v337_v24 = vcvt.s32.f32 %v336_v19  ;;  %v297_v25 = vadd.s32 16, %v2518_v18  ;;  %v301_v28 = vadd.s32 48, %v2518_v18 }
 0x166   :  { %v148_v30 = vmul.f32 0.03125, %v145_v29  ;;  %v182_v31 = vmul.f32 %v180_v26, %v180_v26  ;;  %v151_v32 = vmul.f32 %v2455_v27, %v2455_v27 }
 0x167   :  { %v309_v40 = vcvt.s32.f32 %v301_v28 }
 0x168   :  { %v2461_v33 = vsub.f32 %v2446_v15, %v148_v30  ;;  %v186_v34 = vsel %vm139_vm0, %v182_v31, 0.0  ;;  %v153_v35 = vsel %vm139_vm0, %v151_v32, 0.0  ;;  %v304_v30 = vcvt.s32.f32 %v296_v22 }
 0x169   :  { %187 = vadd.xlane.f32.xlu0 %v186_v34  ;;  %154 = vadd.xlane.f32.xlu1 %v153_v35  ;;  %v2525_v31 = vadd.f32 0.5, %v303_v23  ;;  %v2527_v32 = vadd.f32 0.5, %v337_v24  ;;  %v305_v34 = vcvt.s32.f32 %v297_v25  ;;  %v2543_v48 = vadd.f32 0.5, %v309_v40 }
 0x16a   :  { %v152_v36 = vmul.f32 %v2461_v33, %v2461_v33 }
 0x16b   :  { %v319_v38 = vmul.f32 0.125, %v2525_v31  ;;  %v339_v39 = vmul.f32 0.125, %v2527_v32  ;;  %v2535_v41 = vadd.f32 0.5, %v305_v34  ;;  %v325_v55 = vmul.f32 0.125, %v2543_v48 }
 0x16c   :  { %v156_v37 = vsel %vm139_vm0, %v152_v36, 0.0  ;;  %v302_v36 = vadd.s32 56, %v2518_v18 }
 0x16d   :  { %157 = vadd.xlane.f32.xlu0 %v156_v37  ;;  %v2531_v37 = vadd.f32 0.5, %v304_v30  ;;  %v327_v46 = vfloor.f32 %v319_v38  ;;  %v2541_v47 = vfloor.f32 %v339_v39  ;;  %v321_v49 = vmul.f32 0.125, %v2535_v41 }
 0x16e   :  { %v310_v43 = vcvt.s32.f32 %v302_v36  ;;  %v333_v62 = vfloor.f32 %v325_v55 }
 0x16f   :  { %v320_v45 = vmul.f32 0.125, %v2531_v37  ;;  %vm2551_vm1 = vcmp.eq.f32.partialorder %v327_v46, %v2541_v47 }
 0x170   :  { %v2547_v51 = vadd.f32 0.5, %v310_v43  ;;  %vm2597_vm5 = vcmp.eq.f32.partialorder %v333_v62, %v2541_v47 }
 0x171   :  { %v328_v53 = vfloor.f32 %v320_v45  ;;  %v2611_v14 = vsel %vm2597_vm5, 1.0, %v2297_v16 }
 0x173   :  { %vm2563_vm2 = vcmp.eq.f32.partialorder %v328_v53, %v2541_v47  ;;  %v101_v53 = vld [vmem:[#allocation8 + $0x11] ss:$0 sm:$0xff] }
 0x174   :  { %v2572_v1 = vsel %vm2563_vm2, 1.0, %v2297_v16  ;;  %vm2041_vm11 = vmpackc.low %vm2563_vm2, %vm2551_vm1 }
 0x1f2   :  { %v185_v56 = vpop.xlane.xlu1 %184 }
 0x1f3   :  { %v189_v57 = vmul.f32 0.03125, %v185_v56  ;;  %v307_v56 = vcvt.s32.f32 %v299_v44 }
 0x1f5   :  { %v191_v58 = vadd.f32 1e-12, %v189_v57  ;;  %v2559_v57 = vsel %vm2551_vm1, 1.0, %v2297_v16 }
 0x1f6   :  { %v188_v59 = vpop.xlane.xlu0 %187  ;;  %v2097_v5 = vpack.i.bf16 %v2572_v1, %v2559_v57  ;;  %v155_v34 = vpop.xlane.xlu1 %154 }
 0x1f7   :  { %2137 = vrsqrt.f32 %v191_v58  ;;  %v190_v60 = vmul.f32 0.03125, %v188_v59  ;;  %v329_v58 = vfloor.f32 %v321_v49  ;;  %v159_v36 = vmul.f32 0.03125, %v155_v34  ;;  %v97_v49 = vld [vmem:[#allocation8 + $0x5] ss:$0 sm:$0xff] }
 0x1f8   :  { %2098 = vrot.lane.b32.xlu0 %v2097_v5, %s2299_s17 }
 0x1f9   :  { %v192_v61 = vadd.f32 1e-12, %v190_v60  ;;  %v326_v60 = vmul.f32 0.125, %v2547_v51  ;;  %vm2575_vm3 = vcmp.eq.f32.partialorder %v329_v58, %v2541_v47  ;;  %v161_v39 = vadd.f32 1e-12, %v159_v36 }
 0x1fb   :  { %2139 = vrsqrt.f32 %v192_v61 }
 0x1fc   :  { %2141 = vrsqrt.f32 %v161_v39 }
 0x201   :  { %v2138_v0 = vpop.eup %2137 }
 0x202   :  { %v195_v4 = vmul.f32 %v2138_v0, %v179_v20  ;;  %v2567_v0 = vadd.f32 0.5, %v307_v56 }
 0x204   :  { %v197_v10 = vmul.f32 %v195_v4, %v98_v6  ;;  %v334_v4 = vfloor.f32 %v326_v60 }
 0x205   :  { %v2140_v8 = vpop.eup %2139 }
 0x206   :  { %v196_v12 = vmul.f32 %v2140_v8, %v180_v26  ;;  %v199_v21 = vadd.f32 %v197_v10, %v102_v11  ;;  %v298_v26 = vadd.s32 24, %v2518_v18  ;;  %vm2604_vm6 = vcmp.eq.f32.partialorder %v334_v4, %v2541_v47  ;;  %v2142_v43 = vpop.eup %2141 }
 0x207   :  { %v2619_v19 = vsel %vm2604_vm6, 1.0, %v2297_v16  ;;  %v165_v45 = vmul.f32 %v2142_v43, %v2455_v27  ;;  %v2656_v27 = vsub.s32 0, %v2518_v18  ;;  %vm2053_vm14 = vmpackc.low %vm2604_vm6, %vm2597_vm5 }
 0x208   :  { %v198_v17 = vmul.f32 %v196_v12, %v98_v6  ;;  %v306_v35 = vcvt.s32.f32 %v298_v26  ;;  %v2589_v6 = vsel %vm2575_vm3, 1.0, %v2297_v16 }
 0x20a   :  { %v200_v20 = vadd.f32 %v198_v17, %v102_v11  ;;  %v2537_v42 = vadd.f32 0.5, %v306_v35  ;;  %v2613_v17 = vadd.f32 0.5, %v308_v63  ;;  %v158_v35 = vpop.xlane.xlu0 %157 }
 0x20b   :  { %v160_v38 = vmul.f32 0.03125, %v158_v35 }
 0x20c   :  { %v2092_v29 = vpack.i.bf16 %v200_v20, %v199_v21  ;;  %v322_v50 = vmul.f32 0.125, %v2537_v42  ;;  %v323_v21 = vmul.f32 0.125, %v2567_v0  ;;  %v2112_v20 = vpack.i.bf16 %v2619_v19, %v2611_v14 }
 0x20d   :  { %v324_v22 = vmul.f32 0.125, %v2613_v17  ;;  %v162_v40 = vadd.f32 1e-12, %v160_v38 }
 0x20e   :  { %2093 = vrot.lane.b32.xlu1 %v2092_v29, %s2298_s4  ;;  %v330_v59 = vfloor.f32 %v322_v50  ;;  %v331_v23 = vfloor.f32 %v323_v21  ;;  %2113 = vrot.lane.b32.xlu0 %v2112_v20, %s2299_s17  ;;  %v167_v50 = vmul.f32 %v165_v45, %v97_v49  ;;  %v243_v20 = vsub.s32 1, %v2518_v18 }
 0x20f   :  { %v332_v24 = vfloor.f32 %v324_v22  ;;  %2143 = vrsqrt.f32 %v162_v40 }
 0x210   :  { %vm2580_vm4 = vcmp.eq.f32.partialorder %v330_v59, %v2541_v47  ;;  %vm2628_vm7 = vcmp.eq.f32.partialorder %v331_v23, %v2541_v47  ;;  %v169_v59 = vadd.f32 %v167_v50, %v101_v53 }
 0x211   :  { %v2594_v8 = vsel %vm2580_vm4, 1.0, %v2297_v16  ;;  %vm2633_vm8 = vcmp.eq.f32.partialorder %v332_v24, %v2541_v47  ;;  %v2640_v28 = vsel %vm2628_vm7, 1.0, %v2297_v16  ;;  %vm2045_vm12 = vmpackc.low %vm2580_vm4, %vm2575_vm3 }
 0x212   :  { %v2102_v11 = vpack.i.bf16 %v2594_v8, %v2589_v6  ;;  %v2645_v29 = vsel %vm2633_vm8, 1.0, %v2297_v16  ;;  %vm2049_vm13 = vmpackc.low %vm2633_vm8, %vm2628_vm7 }
 0x213   :  { %v2107_v30 = vpack.i.bf16 %v2645_v29, %v2640_v28 }
 0x214   :  { %2103 = vrot.lane.b32.xlu1 %v2102_v11, %s2299_s17 }
 0x218   :  { %2108 = vrot.lane.b32.xlu1 %v2107_v30, %s2299_s17 }
 0x219   :  { %v2144_v44 = vpop.eup %2143 }
 0x21a   :  { %v166_v46 = vmul.f32 %v2144_v44, %v2461_v33  ;;  %v92_v33 = vld [vmem:[#allocation8] ss:$8 sm:$0x3] }
 0x21b   :  { %v240_v11 = vrot.slane %v92_v33, %v2656_v27  ;;  %v2664_v39 = vrot.slane %v92_v33, %v243_v20 }
 0x21c   :  { %v168_v52 = vmul.f32 %v166_v46, %v97_v49 }
 0x21e   :  { %v170_v60 = vadd.f32 %v168_v52, %v101_v53 }
 0x26a   :  { %v2099_v21 = vpop.permute.xlu0 %2098 }
 0x26b   :  { %v2101_v22 = vunpack.i.h.bf16 %v2099_v21  ;;  %v2100_v23 = vunpack.i.l.bf16 %v2099_v21 }
 0x280   :  { %v2094_v55 = vpop.permute.xlu1 %2093  ;;  %v2114_v53 = vpop.permute.xlu0 %2113 }
 0x281   :  { %v2096_v56 = vunpack.i.h.bf16 %v2094_v55  ;;  %v2095_v58 = vunpack.i.l.bf16 %v2094_v55  ;;  %v2115_v33 = vunpack.i.l.bf16 %v2114_v53 }
 0x283   :  { %v209_v62 = vsel %vm139_vm0, %v169_v59, %v2095_v58  ;;  %v210_v63 = vsel %vm139_vm0, %v170_v60, %v2096_v56 }
 0x284   :  { %v227_v4 = vpack.c.bf16 %v210_v63, %v209_v62 }
 0x286   :  { %1706 = vmatmul.mubr.msk.bf16.vlgmr.msra.gmra.mrb[0].mxu0 %vm247_vm9, %v227_v4  ;;  %v2104_v5 = vpop.permute.xlu1 %2103  ;;  %v2116_v4 = vunpack.i.h.bf16 %v2114_v53 }
 0x287   :  { %v2105_v24 = vunpack.i.l.bf16 %v2104_v5  ;;  %v2106_v34 = vunpack.i.h.bf16 %v2104_v5  ;;  %1871 = vmatprep.mubr.msk.bf16.mxu0 %vm2300_vm10, %v2297_v16 }
 0x28a   :  { %v2109_v35 = vpop.permute.xlu1 %2108 }
 0x28b   :  { %v2111_v46 = vunpack.i.h.bf16 %v2109_v35  ;;  %v2110_v49 = vunpack.i.l.bf16 %v2109_v35 }
 0x359   :  { %v285_v30 = vpop.f32.mrb[0].mxu0 }
 0x35a   :  { %v2660_v36 = vadd.f32 %v285_v30, %v240_v11  ;;  %v2662_v38 = vpop.f32.mrb[1].mxu0 }
 0x35b   :  { %v289_v40 = vpop.f32.mrb[2].mxu0 }
 0x35c   :  { %v2666_v43 = vadd.f32 %v289_v40, %v240_v11  ;;  %v291_v44 = vpop.f32.mrb[3].mxu0  ;;  %v397_v45 = vmul.f32 %v2100_v23, %v2660_v36  ;;  %v398_v18 = vmul.f32 %v2101_v22, %v2660_v36  ;;  %v399_v52 = vmul.f32 %v2105_v24, %v2660_v36 }
 0x35d   :  { %v2671_v50 = vadd.f32 %v291_v44, %v2664_v39  ;;  %v400_v59 = vmul.f32 %v2106_v34, %v2660_v36  ;;  %v401_v11 = vmul.f32 %v2110_v49, %v2660_v36  ;;  %v402_v21 = vmul.f32 %v2111_v46, %v2660_v36 }
 0x35e   :  { %v431_v55 = vpack.c.bf16 %v398_v18, %v397_v45  ;;  %v405_v56 = vmul.f32 %v2100_v23, %v2666_v43  ;;  %v406_v58 = vmul.f32 %v2101_v22, %v2666_v43  ;;  %v407_v62 = vmul.f32 %v2105_v24, %v2666_v43 }
 0x35f   :  { %v408_v63 = vmul.f32 %v2106_v34, %v2666_v43  ;;  %v432_v5 = vpack.c.bf16 %v400_v59, %v399_v52  ;;  %v409_v22 = vmul.f32 %v2110_v49, %v2666_v43  ;;  %v410_v23 = vmul.f32 %v2111_v46, %v2666_v43 }
 0x360   :  { %443 = vrot.lane.b32.xlu1 %v431_v55, %s2299_s17  ;;  %v435_v60 = vpack.c.bf16 %v406_v58, %v405_v56  ;;  %v433_v24 = vpack.c.bf16 %v402_v21, %v401_v11  ;;  %v403_v30 = vmul.f32 %v2115_v33, %v2660_v36  ;;  %v404_v34 = vmul.f32 %v2116_v4, %v2660_v36 }
 0x361   :  { %v436_v20 = vpack.c.bf16 %v408_v63, %v407_v62  ;;  %v437_v35 = vpack.c.bf16 %v410_v23, %v409_v22  ;;  %v411_v40 = vmul.f32 %v2115_v33, %v2666_v43  ;;  %v412_v44 = vmul.f32 %v2116_v4, %v2666_v43 }
 0x362   :  { %510 = vrot.lane.b32.xlu0 %v435_v60, %s2299_s17  ;;  %v434_v45 = vpack.c.bf16 %v404_v34, %v403_v30  ;;  %v288_v21 = vadd.f32 %v2662_v38, %v2664_v39  ;;  %v430_v30 = vpack.c.bf16 %v2666_v43, %v2666_v43  ;;  %v421_v10 = vmul.f32 %v2559_v57, %v2671_v50 }
 0x363   :  { %v438_v18 = vpack.c.bf16 %v412_v44, %v411_v40  ;;  %v422_v12 = vmul.f32 %v2572_v1, %v2671_v50 }
 0x364   :  { %445 = vrot.lane.b32.xlu1 %v432_v5, %s2299_s17  ;;  %v413_v22 = vmul.f32 %v2559_v57, %v288_v21  ;;  %v414_v23 = vmul.f32 %v2572_v1, %v288_v21  ;;  %v415_v38 = vmul.f32 %v2589_v6, %v288_v21  ;;  %v416_v39 = vmul.f32 %v2594_v8, %v288_v21 }
 0x365   :  { %v418_v40 = vmul.f32 %v2645_v29, %v288_v21  ;;  %v419_v44 = vmul.f32 %v2611_v14, %v288_v21  ;;  %v425_v1 = vmul.f32 %v2640_v28, %v2671_v50 }
 0x366   :  { %512 = vrot.lane.b32.xlu0 %v436_v20, %s2299_s17  ;;  %v674_v34 = vpack.c.bf16 %v414_v23, %v413_v22  ;;  %v424_v22 = vmul.f32 %v2594_v8, %v2671_v50  ;;  %v426_v23 = vmul.f32 %v2645_v29, %v2671_v50  ;;  %v427_v8 = vmul.f32 %v2611_v14, %v2671_v50  ;;  %v771_v14 = vld [vmem:[%s3191_s5 + $0x8] sm:$0xff] }
 0x368   :  { %447 = vrot.lane.b32.xlu1 %v433_v24, %s2299_s17  ;;  %v429_v24 = vpack.c.bf16 %v2660_v36, %v2660_v36  ;;  %v417_v36 = vmul.f32 %v2640_v28, %v288_v21 }
 0x36a   :  { %514 = vrot.lane.b32.xlu0 %v437_v35, %s2299_s17  ;;  %v675_v35 = vpack.c.bf16 %v416_v39, %v415_v38  ;;  %v676_v43 = vpack.c.bf16 %v418_v40, %v417_v36  ;;  %v770_v38 = vld [vmem:[%s3191_s5] sm:$0xff] }
 0x36b   :  { %v779_v36 = vpack.c.bf16 %v771_v14, %v770_v38 }
 0x36c   :  { %449 = vrot.lane.b32.xlu1 %v434_v45, %s2299_s17  ;;  %v420_v45 = vmul.f32 %v2619_v19, %v288_v21  ;;  %v678_v21 = vpack.c.bf16 %v422_v12, %v421_v10  ;;  %v769_v12 = vadd.f32 %v2442_v13, %v2446_v15  ;;  %v863_v13 = vld [vmem:[#allocation5 + $0x10] sm:$0xff]  ;;  %v864_v15 = vld [vmem:[#allocation5 + $0x18] sm:$0xff] }
 0x36e   :  { %516 = vrot.lane.b32.xlu0 %v438_v18, %s2299_s17  ;;  %v677_v18 = vpack.c.bf16 %v420_v45, %v419_v44  ;;  %v773_v44 = vld [vmem:[%s3191_s5 + $0x18] sm:$0xff] }
 0x3d2   :  { %v444_v46 = vpop.permute.xlu1 %443 }
 0x3d3   :  { %v455_v49 = vsel %vm247_vm9, %v444_v46, 0 }
 0x3d4   :  { %v511_v52 = vpop.permute.xlu0 %510  ;;  %1852 = vmatpush3.bf16.xpose.msra.mxu1 %v455_v49 }
 0x3d5   :  { %v522_v53 = vsel %vm247_vm9, %v511_v52, 0  ;;  %1853 = vmatprep.subr.bf16.mxu1 %v2297_v16 }
 0x3d6   :  { %1864 = vmatpush3.bf16.xpose.msra.mxu0 %v522_v53  ;;  %v446_v55 = vpop.permute.xlu1 %445 }
 0x3d7   :  { %1865 = vmatprep.subr.bf16.mxu0 %v2297_v16  ;;  %v458_v58 = vsel %vm247_vm9, %v446_v55, 0 }
 0x3d8   :  { %v513_v56 = vpop.permute.xlu0 %512 }
 0x3d9   :  { %v525_v59 = vsel %vm247_vm9, %v513_v56, 0 }
 0x3da   :  { %v448_v60 = vpop.permute.xlu1 %447 }
 0x3db   :  { %v461_v63 = vsel %vm247_vm9, %v448_v60, 0 }
 0x3dc   :  { %1854 = vmatpush3.bf16.xpose.msra.mxu1 %v458_v58  ;;  %v515_v62 = vpop.permute.xlu0 %514 }
 0x3dd   :  { %1855 = vmatprep.subr.bf16.mxu1 %v2297_v16  ;;  %v528_v4 = vsel %vm247_vm9, %v515_v62, 0 }
 0x3de   :  { %1866 = vmatpush3.bf16.xpose.msra.mxu0 %v525_v59  ;;  %v450_v33 = vpop.permute.xlu1 %449 }
 0x3df   :  { %1867 = vmatprep.subr.bf16.mxu0 %v2297_v16  ;;  %v464_v11 = vsel %vm247_vm9, %v450_v33, 0  ;;  %v2301_v33 = vmov 1.0|1.0  }
 0x3e0   :  { %v517_v5 = vpop.permute.xlu0 %516 }
 0x3e1   :  { %v531_v20 = vsel %vm247_vm9, %v517_v5, 0 }
 0x3e4   :  { %1856 = vmatpush3.bf16.xpose.msra.mxu1 %v461_v63 }
 0x3e5   :  { %1857 = vmatprep.subr.bf16.mxu1 %v2297_v16 }
 0x3e6   :  { %1868 = vmatpush3.bf16.xpose.msra.mxu0 %v528_v4 }
 0x3e7   :  { %1869 = vmatprep.subr.bf16.mxu0 %v2297_v16 }
 0x3ec   :  { %1858 = vmatpush3.bf16.xpose.msra.mxu1 %v464_v11 }
 0x3ed   :  { %2042 = vmatprep.subr.msk.bf16.mxu1 %vm2041_vm11, %v2301_v33 }
 0x3ee   :  { %1870 = vmatpush3.bf16.xpose.msra.mxu0 %v531_v20  ;;  %v423_v20 = vmul.f32 %v2589_v6, %v2671_v50  ;;  %v680_v6 = vpack.c.bf16 %v426_v23, %v425_v1  ;;  %v862_v1 = vld [vmem:[#allocation5 + $0x8] sm:$0xff] }
 0x3ef   :  { %1894 = vmatprep.subr.bf16.mxu0 %v2297_v16 }
 0x3f0   :  { %v679_v57 = vpack.c.bf16 %v424_v22, %v423_v20 }
 0x3f3   :  { %1860 = vmatmul.mubr.msk.bf16.vlgmr.msra.gmra.mrb[0].mxu1 %vm247_vm9, %v429_v24  ;;  %v428_v24 = vmul.f32 %v2619_v19, %v2671_v50 }
 0x3f4   :  { %2044 = vmatpush3.bf16.msk.msra.mxu1 %vm2041_vm11, %v2301_v33 }
 0x3f5   :  { %1872 = vmatmul.mubr.msk.bf16.vlgmr.msra.gmra.mrb[4].mxu0 %vm247_vm9, %v430_v30  ;;  %2046 = vmatprep.subr.msk.bf16.mxu1 %vm2045_vm12, %v2301_v33  ;;  %v681_v30 = vpack.c.bf16 %v428_v24, %v427_v8 }
 0x3f6   :  { %1895 = vmatpush3.bf16.msra.mxu0 %v674_v34  ;;  %1902 = vmatprep.mubr.msk.bf16.mxu0 %vm2300_vm10, %v2297_v16 }
 0x3f7   :  { %1896 = vmatprep.subr.bf16.mxu0 %v2297_v16 }
 0x3f8   :  { %2048 = vmatpush3.bf16.msk.msra.mxu1 %vm2045_vm12, %v2301_v33 }
 0x3f9   :  { %2050 = vmatprep.subr.msk.bf16.mxu1 %vm2049_vm13, %v2301_v33 }
 0x3fa   :  { %1897 = vmatpush3.bf16.msra.mxu0 %v675_v35 }
 0x3fb   :  { %1898 = vmatprep.subr.bf16.mxu0 %v2297_v16 }
 0x3fc   :  { %2052 = vmatpush3.bf16.msk.msra.mxu1 %vm2049_vm13, %v2301_v33 }
 0x3fd   :  { %2054 = vmatprep.subr.msk.bf16.mxu1 %vm2053_vm14, %v2301_v33 }
 0x3fe   :  { %1899 = vmatpush3.bf16.msra.mxu0 %v676_v43  ;;  %v772_v43 = vld [vmem:[%s3191_s5 + $0x10] sm:$0xff] }
 0x3ff   :  { %1900 = vmatprep.subr.bf16.mxu0 %v2297_v16  ;;  %v780_v45 = vpack.c.bf16 %v773_v44, %v772_v43 }
 0x400   :  { %2056 = vmatpush3.bf16.msk.msra.mxu1 %vm2053_vm14, %v2301_v33 }
 0x401   :  { %1906 = vmatprep.subr.bf16.mxu1 %v2297_v16 }
 0x402   :  { %1901 = vmatpush3.bf16.msra.mxu0 %v677_v18  ;;  %v774_v18 = vld [vmem:[%s3191_s5 + $0x20] sm:$0xff] }
 0x403   :  { %1918 = vmatprep.subr.bf16.mxu0 %v2297_v16 }
 0x4c6   :  { %v500_v46 = vpop.f32.mrb[0].mxu1 }
 0x4c7   :  { %v573_v49 = vmul.f32 0.35355338, %v500_v46  ;;  %v1861_v52 = vpop.f32.mrb[1].mxu1  ;;  %v775_v46 = vld [vmem:[%s3191_s5 + $0x28] sm:$0xff] }
 0x4c8   :  { %v503_v53 = vpop.f32.mrb[2].mxu1  ;;  %v567_v55 = vpop.f32.mrb[4].mxu0  ;;  %v776_v52 = vld [vmem:[%s3191_s5 + $0x30] sm:$0xff] }
 0x4c9   :  { %v574_v56 = vmul.f32 0.35355338, %v567_v55  ;;  %v1862_v58 = vpop.f32.mrb[3].mxu1  ;;  %v1873_v59 = vpop.f32.mrb[5].mxu0  ;;  %v575_v60 = vsel %vm247_vm9, %v573_v49, -inf  ;;  %v777_v53 = vld [vmem:[%s3191_s5 + $0x38] sm:$0xff] }
 0x4ca   :  { %v570_v62 = vpop.f32.mrb[6].mxu0  ;;  %576 = vmax.xlane.f32.xlu1 %v575_v60  ;;  %v782_v55 = vpack.c.bf16 %v777_v53, %v776_v52  ;;  %s2302_s5 = smov 96  }
 0x4cb   :  { %v1874_v63 = vpop.f32.mrb[7].mxu0  ;;  %v578_v4 = vsel %vm247_vm9, %v574_v56, -inf }
 0x4cc   :  { %579 = vmax.xlane.f32.xlu0 %v578_v4 }
 0x557   :  { %v577_v54 = vpop.xlane.xlu1 %576 }
 0x558   :  { %v581_v61 = vsub.f32 %v573_v49, %v577_v54  ;;  %v781_v49 = vpack.c.bf16 %v775_v46, %v774_v18  ;;  %v99_v46 = vld [vmem:[#allocation8 + $0x7] ss:$0 sm:$0xff] }
 0x559   :  { %v580_v2 = vpop.xlane.xlu0 %579 }
 0x55a   :  { %v583_v3 = vmul.f32 1.442695, %v581_v61  ;;  %v582_v25 = vsub.f32 %v574_v56, %v580_v2  ;;  %v768_v2 = vadd.f32 %v2436_v7, %v2438_v9  ;;  %v861_v9 = vld [vmem:[#allocation5] sm:$0xff] }
 0x55b   :  { %v2836_v23 = vpack.c.bf16 %v862_v1, %v861_v9  ;;  %v2882_v9 = vmul.f32 0.0625, %v2537_v42  ;;  %v2885_v1 = vmul.f32 0.0625, %v2535_v41 }
 0x55c   :  { %2145 = vpow2.f32 %v583_v3  ;;  %v585_v26 = vmul.f32 1.442695, %v582_v25  ;;  %v93_v3 = vld [vmem:[#allocation8 + $0x1] ss:$0 sm:$0xff] }
 0x55d   :  { %v987_v42 = vfloor.f32 %v2885_v1 }
 0x55e   :  { %2147 = vpow2.f32 %v585_v26 }
 0x55f   :  { %vm995_vm3 = vcmp.eq.f32.partialorder %v987_v42, %v2541_v47 }
 0x566   :  { %v2146_v5 = vpop.eup %2145 }
 0x567   :  { %1891 = vmatprep.mubr.msk.f32.mxu1 %vm247_vm9, %v2146_v5 }
 0x568   :  { %v2148_v11 = vpop.eup %2147 }
 0x569   :  { %1892 = vmatmul.mubr.msk.f32.vlgmr.msra.gmra.mrb[4].mxu1 %vm247_vm9, %v2148_v11 }
 0x56a   :  { %1907 = vmatpush3.bf16.msra.mxu1 %v678_v21  ;;  %1914 = vmatprep.mubr.msk.bf16.mxu1 %vm2300_vm10, %v2297_v16 }
 0x56b   :  { %1908 = vmatprep.subr.bf16.mxu1 %v2297_v16 }
 0x56e   :  { %1909 = vmatpush3.bf16.msra.mxu1 %v679_v57 }
 0x56f   :  { %1910 = vmatprep.subr.bf16.mxu1 %v2297_v16 }
 0x572   :  { %1911 = vmatpush3.bf16.msra.mxu1 %v680_v6  ;;  %v2840_v6 = vpack.c.bf16 %v864_v15, %v863_v13 }
 0x573   :  { %1912 = vmatprep.subr.bf16.mxu1 %v2297_v16 }
 0x576   :  { %1913 = vmatpush3.bf16.msra.mxu1 %v681_v30 }
 0x577   :  { %1930 = vmatprep.subr.bf16.mxu1 %v2297_v16 }
 0x63c   :  { %v1893_v28 = vpop.f32.mrb[4].mxu1 }
 0x63d   :  { %2149 = vrcp.f32 %v1893_v28  ;;  %v659_v29 = vpop.f32.mrb[5].mxu1 }
 0x63e   :  { %2151 = vrcp.f32 %v659_v29 }
 0x647   :  { %v2150_v34 = vpop.eup %2149 }
 0x648   :  { %v2152_v19 = vpop.eup %2151  ;;  %v671_v50 = vmul.f32 %v2150_v34, %v2148_v11 }
 0x649   :  { %v670_v39 = vmul.f32 %v2152_v19, %v2146_v5 }
 0x64a   :  { %v673_v35 = vpack.c.bf16 %v671_v50, %v671_v50 }
 0x64b   :  { %v672_v40 = vpack.c.bf16 %v670_v39, %v670_v39 }
 0x64c   :  { %1915 = vmatmul.mubr.msk.bf16.vlgmr.msra.gmra.mrb[8].mxu1 %vm247_vm9, %v673_v35 }
 0x64d   :  { %1903 = vmatmul.mubr.msk.bf16.vlgmr.msra.gmra.mrb[8].mxu0 %vm247_vm9, %v672_v40  ;;  %1934 = vmatprep.mubr.msk.bf16.mxu1 %vm2300_vm10, %v2297_v16 }
 0x64e   :  { %1919 = vmatpush3.bf16.msra.mxu0 %v779_v36  ;;  %1926 = vmatprep.mubr.msk.bf16.mxu0 %vm2300_vm10, %v2297_v16 }
 0x64f   :  { %1920 = vmatprep.subr.bf16.mxu0 %v2297_v16  ;;  %1931 = vmatpush3.bf16.msra.mxu1 %v2836_v23 }
 0x650   :  { %1932 = vmatprep.subr.bf16.mxu1 %v2297_v16 }
 0x652   :  { %1921 = vmatpush3.bf16.msra.mxu0 %v780_v45 }
 0x653   :  { %1922 = vmatprep.subr.bf16.mxu0 %v2297_v16  ;;  %1933 = vmatpush3.bf16.msra.mxu1 %v2840_v6 }
 0x656   :  { %1923 = vmatpush3.bf16.msra.mxu0 %v781_v49 }
 0x657   :  { %1924 = vmatprep.subr.bf16.mxu0 %v2297_v16 }
 0x65a   :  { %1925 = vmatpush3.bf16.msra.mxu0 %v782_v55 }
 0x65b   :  { %1946 = vmatprep.subr.bf16.mxu0 %v2297_v16 }
 0x71f   :  { %v762_v56 = vpop.f32.mrb[8].mxu1 }
 0x720   :  { %v719_v58 = vpop.f32.mrb[8].mxu0  ;;  %v1916_v59 = vpop.f32.mrb[9].mxu1 }
 0x721   :  { %v778_v60 = vpack.c.bf16 %v762_v56, %v719_v58  ;;  %v1904_v62 = vpop.f32.mrb[9].mxu0  ;;  %v765_v63 = vpop.f32.mrb[10].mxu1  ;;  %v103_v56 = vld [vmem:[#allocation8 + $0x13] ss:$0 sm:$0xff]  ;;  %v111_v59 = vld [vmem:[%s3188_s2] sm:$0xff] }
 0x722   :  { %v722_v4 = vpop.f32.mrb[10].mxu0  ;;  %v1917_v54 = vpop.f32.mrb[11].mxu1 }
 0x723   :  { %v1905_v61 = vpop.f32.mrb[11].mxu0  ;;  %1927 = vmatmul.mubr.msk.bf16.vlgmr.msra.gmra.mrb[12].mxu0 %vm247_vm9, %v778_v60  ;;  %v112_v60 = vld [vmem:[%s3188_s2 + $0x8] sm:$0xff] }
 0x724   :  { %1954 = vmatprep.mubr.msk.bf16.mxu0 %vm2300_vm10, %v2297_v16  ;;  %v912_v4 = vpack.c.bf16 %v112_v60, %v111_v59  ;;  %v2959_v59 = vmul.f32 0.0625, %v2543_v48 }
 0x7f6   :  { %v820_v25 = vpop.f32.mrb[12].mxu0 }
 0x7f7   :  { %v827_v26 = vadd.f32 %v820_v25, %v768_v2  ;;  %v1928_v10 = vpop.f32.mrb[13].mxu0  ;;  %v113_v2 = vld [vmem:[%s3188_s2 + $0x10] sm:$0xff] }
 0x7f8   :  { %v823_v5 = vpop.f32.mrb[14].mxu0  ;;  %v2873_v10 = vmul.f32 0.0625, %v2531_v37  ;;  %v988_v37 = vfloor.f32 %v2882_v9 }
 0x7f9   :  { %v2828_v11 = vadd.f32 %v827_v26, %v93_v3  ;;  %v828_v21 = vadd.f32 %v823_v5, %v769_v12  ;;  %v1929_v20 = vpop.f32.mrb[15].mxu0  ;;  %v2870_v26 = vmul.f32 0.0625, %v2525_v31  ;;  %v95_v31 = vld [vmem:[#allocation8 + $0x3] ss:$0 sm:$0xff] }
 0x7fa   :  { %vm996_vm2 = vcmp.eq.f32.partialorder %v988_v37, %v2541_v47 }
 0x7fb   :  { %v2830_v22 = vadd.f32 %v828_v21, %v93_v3  ;;  %v831_v57 = vsel %vm139_vm0, %v2828_v11, 0.0  ;;  %v114_v3 = vld [vmem:[%s3188_s2 + $0x18] sm:$0xff] }
 0x7fc   :  { %832 = vadd.xlane.f32.xlu0 %v831_v57  ;;  %v913_v25 = vpack.c.bf16 %v114_v3, %v113_v2  ;;  %v985_v57 = vfloor.f32 %v2870_v26 }
 0x7fd   :  { %v834_v7 = vsel %vm139_vm0, %v2830_v22, 0.0 }
 0x7fe   :  { %835 = vadd.xlane.f32.xlu1 %v834_v7  ;;  %v986_v7 = vfloor.f32 %v2873_v10  ;;  %vm993_vm15 = vcmp.eq.f32.partialorder %v985_v57, %v2541_v47 }
 0x800   :  { %vm994_vm1 = vcmp.eq.f32.partialorder %v986_v7, %v2541_v47 }
 0x889   :  { %v833_v8 = vpop.xlane.xlu0 %832 }
 0x88a   :  { %v837_v24 = vmul.f32 0.03125, %v833_v8 }
 0x88b   :  { %v836_v30 = vpop.xlane.xlu1 %835 }
 0x88c   :  { %v839_v28 = vsub.f32 %v2828_v11, %v837_v24  ;;  %v838_v29 = vmul.f32 0.03125, %v836_v30  ;;  %v2900_v30 = vsel %vm993_vm15, 1.0, %v2297_v16 }
 0x88e   :  { %v840_v34 = vsub.f32 %v2830_v22, %v838_v29  ;;  %v841_v38 = vmul.f32 %v839_v28, %v839_v28 }
 0x890   :  { %v843_v14 = vsel %vm139_vm0, %v841_v38, 0.0  ;;  %v842_v19 = vmul.f32 %v840_v34, %v840_v34  ;;  %v2911_v38 = vmul.f32 0.0625, %v2613_v17 }
 0x891   :  { %844 = vadd.xlane.f32.xlu0 %v843_v14 }
 0x892   :  { %v846_v50 = vsel %vm139_vm0, %v842_v19, 0.0 }
 0x893   :  { %847 = vadd.xlane.f32.xlu1 %v846_v50 }
 0x8a4   :  { %918 = vrot.lane.b32.xlu1 %v2840_v6, %s2302_s5 }
 0x8a7   :  { %916 = vrot.lane.b32.xlu0 %v2836_v23, %s2302_s5 }
 0x91e   :  { %v845_v39 = vpop.xlane.xlu0 %844 }
 0x91f   :  { %v849_v35 = vmul.f32 0.03125, %v845_v39  ;;  %v2923_v39 = vmul.f32 0.0625, %v2567_v0 }
 0x920   :  { %v848_v36 = vpop.xlane.xlu1 %847 }
 0x921   :  { %v851_v40 = vadd.f32 1e-12, %v849_v35  ;;  %v850_v43 = vmul.f32 0.03125, %v848_v36  ;;  %v2930_v36 = vsel %vm996_vm2, 1.0, %v2297_v16 }
 0x922   :  { %v917_v44 = vpop.permute.xlu0 %916 }
 0x923   :  { %2153 = vrsqrt.f32 %v851_v40  ;;  %v852_v45 = vadd.f32 1e-12, %v850_v43  ;;  %1938 = vmatprep.subr.bf16.mxu1 %v917_v44  ;;  %v990_v43 = vfloor.f32 %v2911_v38 }
 0x924   :  { %v919_v61 = vpop.permute.xlu1 %918 }
 0x925   :  { %2155 = vrsqrt.f32 %v852_v45  ;;  %v2934_v45 = vsel %vm995_vm3, 1.0, %v2297_v16  ;;  %vm998_vm4 = vcmp.eq.f32.partialorder %v990_v43, %v2541_v47 }
 0x92d   :  { %v2154_v18 = vpop.eup %2153 }
 0x92e   :  { %v855_v49 = vmul.f32 %v2154_v18, %v839_v28  ;;  %v2903_v28 = vsel %vm994_vm1, 1.0, %v2297_v16 }
 0x92f   :  { %v2156_v52 = vpop.eup %2155 }
 0x930   :  { %v857_v53 = vmul.f32 %v855_v49, %v99_v46  ;;  %v856_v55 = vmul.f32 %v2156_v52, %v840_v34 }
 0x932   :  { %v858_v58 = vmul.f32 %v856_v55, %v99_v46  ;;  %v859_v62 = vadd.f32 %v857_v53, %v103_v56  ;;  %v989_v46 = vfloor.f32 %v2923_v39  ;;  %v2950_v55 = vmul.f32 0.0625, %v2547_v51 }
 0x934   :  { %v860_v63 = vadd.f32 %v858_v58, %v103_v56  ;;  %vm997_vm5 = vcmp.eq.f32.partialorder %v989_v46, %v2541_v47  ;;  %v992_v51 = vfloor.f32 %v2950_v55 }
 0x936   :  { %v865_v54 = vpack.c.bf16 %v860_v63, %v859_v62  ;;  %v2962_v62 = vsel %vm998_vm4, 1.0, %v2297_v16  ;;  %v2966_v63 = vsel %vm997_vm5, 1.0, %v2297_v16  ;;  %vm1000_vm6 = vcmp.eq.f32.partialorder %v992_v51, %v2541_v47 }
 0x938   :  { %1935 = vmatmul.mubr.msk.bf16.vlgmr.msra.gmra.mrb[12].mxu1 %vm139_vm0, %v865_v54 }
 0x939   :  { %1939 = vmatpush3.bf16.msra.mxu1 %v917_v44  ;;  %1942 = vmatprep.mubr.msk.bf16.mxu1 %vm139_vm0, %v912_v4 }
 0x93a   :  { %1940 = vmatprep.subr.bf16.mxu1 %v919_v61 }
 0x93d   :  { %1941 = vmatpush3.bf16.msra.mxu1 %v919_v61  ;;  %v991_v61 = vfloor.f32 %v2959_v59 }
 0x93e   :  { %1958 = vmatprep.subr.bf16.mxu1 %v2297_v16 }
 0x93f   :  { %vm999_vm7 = vcmp.eq.f32.partialorder %v991_v61, %v2541_v47 }
 0x940   :  { %1943 = vmatmul.mubr.msk.bf16.vlgmr.msra.gmra.mrb[16].mxu1 %vm139_vm0, %v913_v25 }
 0x941   :  { %1966 = vmatprep.mubr.msk.bf16.mxu1 %vm2300_vm10, %v2297_v16 }
 0xa0b   :  { %v2875_v12 = vpop.f32.mrb[12].mxu1 }
 0xa0c   :  { %v1936_v5 = vpop.f32.mrb[13].mxu1 }
 0xa0d   :  { %v2877_v21 = vpop.f32.mrb[14].mxu1 }
 0xa0e   :  { %v1937_v20 = vpop.f32.mrb[15].mxu1 }
 0xa13   :  { %v1944_v13 = vpop.f32.mrb[16].mxu1 }
 0xa14   :  { %v2894_v15 = vadd.f32 %v1944_v13, %v95_v31  ;;  %v962_v8 = vpop.f32.mrb[17].mxu1  ;;  %v2991_v13 = vsel %vm999_vm7, 1.0, %v2297_v16 }
 0xa15   :  { %v2897_v24 = vadd.f32 %v962_v8, %v95_v31  ;;  %v1945_v41 = vpop.f32.mrb[18].mxu1 }
 0xa16   :  { %v2905_v29 = vadd.f32 %v1945_v41, %v95_v31  ;;  %v965_v34 = vpop.f32.mrb[19].mxu1  ;;  %v1025_v19 = vmul.f32 %v2900_v30, %v2894_v15  ;;  %v1027_v53 = vmul.f32 %v2934_v45, %v2894_v15  ;;  %v1029_v3 = vmul.f32 %v2966_v63, %v2894_v15 }
 0xa17   :  { %v2913_v14 = vadd.f32 %v965_v34, %v95_v31  ;;  %v1017_v35 = vmul.f32 %v2900_v30, %v2897_v24  ;;  %v1019_v56 = vmul.f32 %v2934_v45, %v2897_v24  ;;  %v1021_v25 = vmul.f32 %v2966_v63, %v2897_v24 }
 0xa18   :  { %v1026_v50 = vmul.f32 %v2903_v28, %v2905_v29  ;;  %v1028_v0 = vmul.f32 %v2930_v36, %v2905_v29  ;;  %v1030_v54 = vmul.f32 %v2962_v62, %v2905_v29  ;;  %v2988_v31 = vsel %vm1000_vm6, 1.0, %v2297_v16 }
 0xa19   :  { %v1018_v17 = vmul.f32 %v2903_v28, %v2913_v14  ;;  %v1020_v52 = vmul.f32 %v2930_v36, %v2913_v14  ;;  %v1022_v2 = vmul.f32 %v2962_v62, %v2913_v14  ;;  %v1032_v41 = vmul.f32 %v2988_v31, %v2905_v29 }
 0xa1a   :  { %v1087_v40 = vpack.c.bf16 %v1026_v50, %v1025_v19  ;;  %v1088_v58 = vpack.c.bf16 %v1028_v0, %v1027_v53  ;;  %v1089_v5 = vpack.c.bf16 %v1030_v54, %v1029_v3  ;;  %v1024_v19 = vmul.f32 %v2988_v31, %v2913_v14 }
 0xa1b   :  { %v1083_v44 = vpack.c.bf16 %v1018_v17, %v1017_v35  ;;  %v1084_v60 = vpack.c.bf16 %v1020_v52, %v1019_v56  ;;  %v1085_v20 = vpack.c.bf16 %v1022_v2, %v1021_v25  ;;  %v1031_v47 = vmul.f32 %v2991_v13, %v2894_v15  ;;  %v3017_v56 = vld [vmem:[%s3189_s3 + $0x1] sm:$0x1] }
 0xa1c   :  { %v1150_v18 = vsel %vm139_vm0, %v1087_v40, 0  ;;  %v1153_v4 = vsel %vm139_vm0, %v1088_v58, 0  ;;  %v1156_v8 = vsel %vm139_vm0, %v1089_v5, 0  ;;  %v1023_v50 = vmul.f32 %v2991_v13, %v2897_v24  ;;  %v94_v40 = vld [vmem:[#allocation8 + $0x2] ss:$0 sm:$0xff] }
 0xa1d   :  { %1959 = vmatpush3.bf16.xpose.msra.mxu1 %v1150_v18  ;;  %v1095_v49 = vsel %vm139_vm0, %v1083_v44, 0  ;;  %v1098_v48 = vsel %vm139_vm0, %v1084_v60, 0  ;;  %v1101_v34 = vsel %vm139_vm0, %v1085_v20, 0  ;;  %v1090_v35 = vpack.c.bf16 %v1032_v41, %v1031_v47 }
 0xa1e   :  { %1947 = vmatpush3.bf16.xpose.msra.mxu0 %v1095_v49  ;;  %1960 = vmatprep.subr.bf16.mxu1 %v2297_v16  ;;  %v1086_v17 = vpack.c.bf16 %v1024_v19, %v1023_v50  ;;  %v909_v0 = vadd.f32 %v2877_v21, %v94_v40  ;;  %v906_v49 = vadd.f32 %v2875_v12, %v94_v40  ;;  %v3022_v21 = vld [vmem:[%s3189_s3] sm:$0x1]  ;;  %v1744_v12 = vadd.f32 -1.0, %v3017_v56 }
 0xa1f   :  { %1948 = vmatprep.subr.bf16.mxu0 %v2297_v16  ;;  %v1159_v44 = vsel %vm139_vm0, %v1090_v35, 0  ;;  %v1743_v58 = vadd.f32 -1.0, %v3022_v21 }
 0xa20   :  { %v1104_v18 = vsel %vm139_vm0, %v1086_v17, 0  ;;  %v1082_v52 = vpack.c.bf16 %v909_v0, %v909_v0  ;;  %v1081_v53 = vpack.c.bf16 %v906_v49, %v906_v49  ;;  %v1206_v60 = vmul.f32 1e+30, %v1744_v12 }
 0xa21   :  { %v2127_v0 = vpack.i.bf16 %v2962_v62, %v2966_v63  ;;  %v1233_v49 = vmul.f32 0.0625, %v2527_v32 }
 0xa22   :  { %v1216_v54 = vrot.slane %v1206_v60, %v2656_v27 }
 0xa25   :  { %1961 = vmatpush3.bf16.xpose.msra.mxu1 %v1153_v4  ;;  %v1205_v4 = vmul.f32 1e+30, %v1743_v58 }
 0xa26   :  { %1949 = vmatpush3.bf16.xpose.msra.mxu0 %v1098_v48  ;;  %1962 = vmatprep.subr.bf16.mxu1 %v2297_v16 }
 0xa27   :  { %1950 = vmatprep.subr.bf16.mxu0 %v2297_v16  ;;  %v1212_v2 = vrot.slane %v1205_v4, %v2656_v27 }
 0xa2d   :  { %1963 = vmatpush3.bf16.xpose.msra.mxu1 %v1156_v8 }
 0xa2e   :  { %1951 = vmatpush3.bf16.xpose.msra.mxu0 %v1101_v34  ;;  %1964 = vmatprep.subr.bf16.mxu1 %v2297_v16 }
 0xa2f   :  { %1952 = vmatprep.subr.bf16.mxu0 %v2297_v16 }
 0xa35   :  { %1965 = vmatpush3.bf16.xpose.msra.mxu1 %v1159_v44  ;;  %v2122_v44 = vpack.i.bf16 %v2930_v36, %v2934_v45 }
 0xa36   :  { %1953 = vmatpush3.bf16.xpose.msra.mxu0 %v1104_v18  ;;  %1989 = vmatprep.subr.bf16.mxu1 %v2297_v16  ;;  %v2117_v18 = vpack.i.bf16 %v2903_v28, %v2900_v30 }
 0xa3c   :  { %1967 = vmatmul.mubr.msk.bf16.vlgmr.msra.gmra.mrb[20].mxu1 %vm139_vm0, %v1082_v52  ;;  %v1234_v52 = vfloor.f32 %v1233_v49 }
 0xa3d   :  { %1955 = vmatmul.mubr.msk.bf16.vlgmr.msra.gmra.mrb[16].mxu0 %vm139_vm0, %v1081_v53  ;;  %1997 = vmatprep.mubr.msk.bf16.mxu1 %vm2300_vm10, %v2297_v16  ;;  %v2132_v53 = vpack.i.bf16 %v2988_v31, %v2991_v13 }
 0xa3e   :  { %vm1235_vm8 = vcmp.eq.f32.partialorder %v985_v57, %v1234_v52  ;;  %vm1236_vm11 = vcmp.eq.f32.partialorder %v986_v7, %v1234_v52  ;;  %vm1237_vm12 = vcmp.eq.f32.partialorder %v987_v42, %v1234_v52  ;;  %vm1238_vm14 = vcmp.eq.f32.partialorder %v988_v37, %v1234_v52 }
 0xa3f   :  { %vm2057_vm13 = vmpackc.low %vm1236_vm11, %vm1235_vm8  ;;  %vm1239_vm1 = vcmp.eq.f32.partialorder %v989_v46, %v1234_v52  ;;  %vm1240_vm2 = vcmp.eq.f32.partialorder %v990_v43, %v1234_v52  ;;  %vm1241_vm4 = vcmp.eq.f32.partialorder %v991_v61, %v1234_v52  ;;  %vm1242_vm5 = vcmp.eq.f32.partialorder %v992_v51, %v1234_v52 }
 0xa40   :  { %2058 = vmatprep.subr.msk.bf16.mxu0 %vm2057_vm13, %v2301_v33  ;;  %vm2061_vm15 = vmpackc.low %vm1238_vm14, %vm1237_vm12  ;;  %v1349_v52 = vrot.slane %v3022_v21, %v2656_v27 }
 0xa41   :  { %2060 = vmatpush3.bf16.msk.msra.mxu0 %vm2057_vm13, %v2301_v33  ;;  %vm2065_vm3 = vmpackc.low %vm1240_vm2, %vm1239_vm1 }
 0xa42   :  { %2062 = vmatprep.subr.msk.bf16.mxu0 %vm2061_vm15, %v2301_v33  ;;  %vm2069_vm6 = vmpackc.low %vm1242_vm5, %vm1241_vm4 }
 0xa45   :  { %2064 = vmatpush3.bf16.msk.msra.mxu0 %vm2061_vm15, %v2301_v33 }
 0xa46   :  { %2066 = vmatprep.subr.msk.bf16.mxu0 %vm2065_vm3, %v2301_v33 }
 0xa49   :  { %2068 = vmatpush3.bf16.msk.msra.mxu0 %vm2065_vm3, %v2301_v33 }
 0xa4a   :  { %2070 = vmatprep.subr.msk.bf16.mxu0 %vm2069_vm6, %v2301_v33 }
 0xa4d   :  { %2072 = vmatpush3.bf16.msk.msra.mxu0 %vm2069_vm6, %v2301_v33 }
 0xa4e   :  { %2001 = vmatprep.subr.bf16.mxu0 %v2297_v16 }
 0xb0f   :  { %v1195_v48 = vpop.f32.mrb[20].mxu1 }
 0xb10   :  { %v1202_v3 = vmul.f32 0.35355338, %v1195_v48  ;;  %v1140_v25 = vpop.f32.mrb[16].mxu0  ;;  %v1968_v5 = vpop.f32.mrb[21].mxu1 }
 0xb11   :  { %v1201_v20 = vmul.f32 0.35355338, %v1140_v25  ;;  %v1956_v8 = vpop.f32.mrb[17].mxu0  ;;  %v1198_v41 = vpop.f32.mrb[22].mxu1 }
 0xb12   :  { %v1143_v34 = vpop.f32.mrb[18].mxu0  ;;  %v1969_v19 = vpop.f32.mrb[23].mxu1  ;;  %v1220_v47 = vadd.f32 %v1216_v54, %v1202_v3 }
 0xb13   :  { %v1957_v50 = vpop.f32.mrb[19].mxu0  ;;  %v1219_v35 = vadd.f32 %v1212_v2, %v1201_v20 }
 0xb14   :  { %v1224_v17 = vsel %vm247_vm9, %v1220_v47, -inf }
 0xb15   :  { %1225 = vmax.xlane.f32.xlu0 %v1224_v17  ;;  %v1221_v40 = vsel %vm247_vm9, %v1219_v35, -inf }
 0xb16   :  { %1222 = vmax.xlane.f32.xlu1 %v1221_v40 }
 0xb27   :  { %2123 = vrot.lane.b32.xlu1 %v2122_v44, %s2298_s4 }
 0xb2b   :  { %2118 = vrot.lane.b32.xlu0 %v2117_v18, %s2298_s4  ;;  %2128 = vrot.lane.b32.xlu1 %v2127_v0, %s2298_s4  ;;  %v1353_v0 = vrot.slane %v3017_v56, %v2656_v27 }
 0xb2f   :  { %2133 = vrot.lane.b32.xlu0 %v2132_v53, %s2298_s4 }
 0xba2   :  { %v1226_v32 = vpop.xlane.xlu0 %1225 }
 0xba3   :  { %v1228_v26 = vsub.f32 %v1220_v47, %v1226_v32  ;;  %v1223_v10 = vpop.xlane.xlu1 %1222 }
 0xba4   :  { %v1227_v57 = vsub.f32 %v1219_v35, %v1223_v10 }
 0xba5   :  { %v1231_v7 = vmul.f32 1.442695, %v1228_v26 }
 0xba6   :  { %v1229_v9 = vmul.f32 1.442695, %v1227_v57  ;;  %v2119_v1 = vpop.permute.xlu0 %2118 }
 0xba7   :  { %2157 = vpow2.f32 %v1231_v7  ;;  %v2121_v37 = vunpack.i.h.bf16 %v2119_v1  ;;  %v2120_v42 = vunpack.i.l.bf16 %v2119_v1  ;;  %v2124_v30 = vpop.permute.xlu1 %2123 }
 0xba8   :  { %2159 = vpow2.f32 %v1229_v9  ;;  %v2126_v28 = vunpack.i.h.bf16 %v2124_v30  ;;  %v2125_v38 = vunpack.i.l.bf16 %v2124_v30 }
 0xba9   :  { %v1074_v39 = vmul.f32 %v2121_v37, %v2905_v29  ;;  %v1065_v33 = vmul.f32 %v2120_v42, %v2897_v24  ;;  %v1066_v36 = vmul.f32 %v2121_v37, %v2913_v14  ;;  %v1073_v43 = vmul.f32 %v2120_v42, %v2894_v15 }
 0xbaa   :  { %v1076_v45 = vmul.f32 %v2126_v28, %v2905_v29  ;;  %v1075_v46 = vmul.f32 %v2125_v38, %v2894_v15  ;;  %v2134_v55 = vpop.permute.xlu0 %2133  ;;  %v1068_v63 = vmul.f32 %v2126_v28, %v2913_v14  ;;  %v1067_v61 = vmul.f32 %v2125_v38, %v2897_v24 }
 0xbab   :  { %v2129_v59 = vpop.permute.xlu1 %2128  ;;  %v1364_v62 = vpack.c.bf16 %v1074_v39, %v1073_v43  ;;  %v1360_v51 = vpack.c.bf16 %v1066_v36, %v1065_v33  ;;  %v2136_v12 = vunpack.i.h.bf16 %v2134_v55  ;;  %v2135_v58 = vunpack.i.l.bf16 %v2134_v55  ;;  %v96_v36 = vld [vmem:[#allocation8 + $0x4] ss:$0 sm:$0xff] }
 0xbac   :  { %v2131_v31 = vunpack.i.h.bf16 %v2129_v59  ;;  %v2130_v13 = vunpack.i.l.bf16 %v2129_v59  ;;  %v1365_v54 = vpack.c.bf16 %v1076_v45, %v1075_v46  ;;  %v1361_v3 = vpack.c.bf16 %v1068_v63, %v1067_v61 }
 0xbad   :  { %1431 = vrot.lane.b32.xlu0 %v1364_v62, %s2302_s5  ;;  %1372 = vrot.lane.b32.xlu1 %v1360_v51, %s2302_s5  ;;  %v1080_v20 = vmul.f32 %v2136_v12, %v2905_v29  ;;  %v1079_v8 = vmul.f32 %v2135_v58, %v2894_v15  ;;  %v1071_v34 = vmul.f32 %v2135_v58, %v2897_v24 }
 0xbae   :  { %v1078_v60 = vmul.f32 %v2131_v31, %v2905_v29  ;;  %v1077_v4 = vmul.f32 %v2130_v13, %v2894_v15  ;;  %v1070_v48 = vmul.f32 %v2131_v31, %v2913_v14  ;;  %v1069_v2 = vmul.f32 %v2130_v13, %v2897_v24 }
 0xbaf   :  { %v1072_v19 = vmul.f32 %v2136_v12, %v2913_v14  ;;  %v1367_v29 = vpack.c.bf16 %v1080_v20, %v1079_v8  ;;  %v1574_v8 = vld [vmem:[#allocation7 + $0x18] sm:$0xff] }
 0xbb0   :  { %v1366_v41 = vpack.c.bf16 %v1078_v60, %v1077_v4  ;;  %v1362_v47 = vpack.c.bf16 %v1070_v48, %v1069_v2 }
 0xbb1   :  { %v2158_v25 = vpop.eup %2157  ;;  %1433 = vrot.lane.b32.xlu0 %v1365_v54, %s2302_s5  ;;  %1374 = vrot.lane.b32.xlu1 %v1361_v3, %s2302_s5  ;;  %v1363_v50 = vpack.c.bf16 %v1072_v19, %v1071_v34  ;;  %v1571_v3 = vld [vmem:[#allocation7] sm:$0xff]  ;;  %v1625_v19 = vld [vmem:[%s3194_s8 + $0x8] sm:$0xff] }
 0xbb2   :  { %v2160_v5 = vpop.eup %2159  ;;  %v1624_v34 = vld [vmem:[%s3194_s8] sm:$0xff] }
 0xbb3   :  { %1986 = vmatprep.mubr.msk.f32.mxu0 %vm247_vm9, %v2160_v5 }
 0xbb4   :  { %1987 = vmatmul.mubr.msk.f32.vlgmr.msra.gmra.mrb[20].mxu0 %vm247_vm9, %v2158_v25 }
 0xbb5   :  { %1435 = vrot.lane.b32.xlu0 %v1366_v41, %s2302_s5  ;;  %2009 = vmatprep.mubr.msk.bf16.mxu0 %vm2300_vm10, %v2297_v16 }
 0xbb6   :  { %1376 = vrot.lane.b32.xlu1 %v1362_v47, %s2302_s5  ;;  %v1626_v47 = vld [vmem:[%s3194_s8 + $0x10] sm:$0xff] }
 0xbb9   :  { %1437 = vrot.lane.b32.xlu0 %v1367_v29, %s2302_s5  ;;  %v1633_v29 = vpack.c.bf16 %v1625_v19, %v1624_v34 }
 0xbba   :  { %1378 = vrot.lane.b32.xlu1 %v1363_v50, %s2302_s5  ;;  %v1627_v50 = vld [vmem:[%s3194_s8 + $0x18] sm:$0xff] }
 0xbbd   :  { %1489 = vrot.lane.b32.xlu0 %v2840_v6, %s2298_s4 }
 0xbbe   :  { %1487 = vrot.lane.b32.xlu1 %v2836_v23, %s2298_s4 }
 0xc1f   :  { %v1432_v15 = vpop.permute.xlu0 %1431  ;;  %v1373_v24 = vpop.permute.xlu1 %1372 }
 0xc20   :  { %2002 = vmatpush3.bf16.msra.mxu0 %v1432_v15  ;;  %1990 = vmatpush3.bf16.msra.mxu1 %v1373_v24  ;;  %v1634_v15 = vpack.c.bf16 %v1627_v50, %v1626_v47 }
 0xc21   :  { %2003 = vmatprep.subr.bf16.mxu0 %v2297_v16  ;;  %1991 = vmatprep.subr.bf16.mxu1 %v2297_v16 }
 0xc23   :  { %v1434_v14 = vpop.permute.xlu0 %1433  ;;  %v1375_v35 = vpop.permute.xlu1 %1374 }
 0xc24   :  { %2004 = vmatpush3.bf16.msra.mxu0 %v1434_v14  ;;  %1992 = vmatpush3.bf16.msra.mxu1 %v1375_v35 }
 0xc25   :  { %2005 = vmatprep.subr.bf16.mxu0 %v2297_v16  ;;  %1993 = vmatprep.subr.bf16.mxu1 %v2297_v16 }
 0xc27   :  { %v1436_v6 = vpop.permute.xlu0 %1435 }
 0xc28   :  { %v1377_v17 = vpop.permute.xlu1 %1376  ;;  %2006 = vmatpush3.bf16.msra.mxu0 %v1436_v6 }
 0xc29   :  { %1994 = vmatpush3.bf16.msra.mxu1 %v1377_v17  ;;  %2007 = vmatprep.subr.bf16.mxu0 %v2297_v16 }
 0xc2a   :  { %1995 = vmatprep.subr.bf16.mxu1 %v2297_v16 }
 0xc2b   :  { %v1438_v23 = vpop.permute.xlu0 %1437 }
 0xc2c   :  { %v1379_v40 = vpop.permute.xlu1 %1378  ;;  %2008 = vmatpush3.bf16.msra.mxu0 %v1438_v23 }
 0xc2d   :  { %1996 = vmatpush3.bf16.msra.mxu1 %v1379_v40  ;;  %2029 = vmatprep.subr.bf16.mxu0 %v2297_v16 }
 0xc2e   :  { %2013 = vmatprep.subr.bf16.mxu1 %v2297_v16 }
 0xc2f   :  { %v1490_v27 = vpop.permute.xlu0 %1489 }
 0xc30   :  { %v1488_v1 = vpop.permute.xlu1 %1487 }
 0xc87   :  { %v1988_v44 = vpop.f32.mrb[20].mxu0 }
 0xc88   :  { %2161 = vrcp.f32 %v1988_v44  ;;  %v1331_v18 = vpop.f32.mrb[21].mxu0  ;;  %v100_v44 = vld [vmem:[#allocation8 + $0x10] ss:$0 sm:$0xff] }
 0xc89   :  { %2163 = vrcp.f32 %v1331_v18 }
 0xc92   :  { %v2162_v49 = vpop.eup %2161 }
 0xc93   :  { %v2164_v53 = vpop.eup %2163  ;;  %v1343_v32 = vmul.f32 %v2162_v49, %v2158_v25  ;;  %v1572_v25 = vld [vmem:[#allocation7 + $0x8] sm:$0xff] }
 0xc94   :  { %v1342_v26 = vmul.f32 %v2164_v53, %v2160_v5  ;;  %v1573_v5 = vld [vmem:[#allocation7 + $0x10] sm:$0xff]  ;;  %v1576_v20 = vpack.c.bf16 %v1572_v25, %v1571_v3 }
 0xc95   :  { %v1357_v10 = vmul.f32 %v1353_v0, %v1343_v32  ;;  %v1577_v41 = vpack.c.bf16 %v1574_v8, %v1573_v5  ;;  %v104_v53 = vld [vmem:[#allocation8 + $0x14] ss:$0 sm:$0xff] }
 0xc96   :  { %v1356_v57 = vmul.f32 %v1349_v52, %v1342_v26 }
 0xc97   :  { %v1359_v7 = vpack.c.bf16 %v1357_v10, %v1357_v10 }
 0xc98   :  { %v1358_v9 = vpack.c.bf16 %v1356_v57, %v1356_v57 }
 0xc99   :  { %2010 = vmatmul.mubr.msk.bf16.vlgmr.msra.gmra.mrb[24].mxu0 %vm247_vm9, %v1359_v7  ;;  %v1628_v7 = vld [vmem:[%s3194_s8 + $0x20] sm:$0xff] }
 0xc9a   :  { %1998 = vmatmul.mubr.msk.bf16.vlgmr.msra.gmra.mrb[24].mxu1 %vm247_vm9, %v1358_v9  ;;  %2037 = vmatprep.mubr.msk.bf16.mxu0 %vm2300_vm10, %v2297_v16  ;;  %v1629_v9 = vld [vmem:[%s3194_s8 + $0x28] sm:$0xff] }
 0xc9b   :  { %2014 = vmatpush3.bf16.msra.mxu1 %v1488_v1  ;;  %2017 = vmatprep.mubr.msk.bf16.mxu1 %vm2300_vm10, %v2297_v16  ;;  %v1630_v1 = vld [vmem:[%s3194_s8 + $0x30] sm:$0xff] }
 0xc9c   :  { %2015 = vmatprep.subr.bf16.mxu1 %v2297_v16  ;;  %2030 = vmatpush3.bf16.msra.mxu0 %v1633_v29 }
 0xc9d   :  { %2031 = vmatprep.subr.bf16.mxu0 %v2297_v16 }
 0xc9f   :  { %2016 = vmatpush3.bf16.msra.mxu1 %v1490_v27  ;;  %v1635_v27 = vpack.c.bf16 %v1629_v9, %v1628_v7 }
 0xca0   :  { %2021 = vmatprep.subr.bf16.mxu1 %v2297_v16  ;;  %2032 = vmatpush3.bf16.msra.mxu0 %v1634_v15 }
 0xca1   :  { %2033 = vmatprep.subr.bf16.mxu0 %v2297_v16 }
 0xca4   :  { %2034 = vmatpush3.bf16.msra.mxu0 %v1635_v27 }
 0xca5   :  { %2035 = vmatprep.subr.bf16.mxu0 %v2297_v16 }
 0xd6c   :  { %v1480_v56 = vpop.f32.mrb[24].mxu0 }
 0xd6d   :  { %v1421_v21 = vpop.f32.mrb[24].mxu1  ;;  %v2011_v37 = vpop.f32.mrb[25].mxu0 }
 0xd6e   :  { %v1486_v42 = vpack.c.bf16 %v1480_v56, %v1421_v21  ;;  %v1999_v30 = vpop.f32.mrb[25].mxu1  ;;  %v1483_v28 = vpop.f32.mrb[26].mxu0  ;;  %v1631_v56 = vld [vmem:[%s3194_s8 + $0x38] sm:$0xff]  ;;  %v105_v37 = vld [vmem:[#allocation8 + $0x15] ss:$0 sm:$0xff]  ;;  %s2303_s8 = smov [#allocation10]  }
 0xd6f   :  { %v1424_v38 = vpop.f32.mrb[26].mxu1  ;;  %v2012_v39 = vpop.f32.mrb[27].mxu0  ;;  %v1636_v21 = vpack.c.bf16 %v1631_v56, %v1630_v1  ;;  %s1692_s1 = sshll.u32 %s2303_s8, 4  ;;  %s1693_s1 = int_to_ptr.vmem [resolvable:$true] %s1692_s1 }
 0xd70   :  { %v2000_v33 = vpop.f32.mrb[27].mxu1  ;;  %2018 = vmatmul.mubr.msk.bf16.vlgmr.msra.gmra.mrb[28].mxu1 %vm139_vm0, %v1486_v42  ;;  %s2257_s16 = scalar_lea.vmem %s1693_s1, 256  ;;  %p2262_p5 = scmp.lt.s32.totalorder %s1693_s1, %s1693_s1 }
 0xd71   :  { %2025 = vmatprep.mubr.msk.bf16.mxu1 %vm2300_vm10, %v2297_v16  ;;  %2022 = vmatpush3.bf16.msra.mxu1 %v1576_v20  ;;  %p2258_p4 = scmp.ne.s32.totalorder %s1693_s1, %s2257_s16  ;;  %p2263_p6 = scmp.lt.s32.totalorder %s2257_s16, %s2257_s16 }
 0xd72   :  { %2023 = vmatprep.subr.bf16.mxu1 %v2297_v16  ;;  %2036 = vmatpush3.bf16.msra.mxu0 %v1636_v21 }
 0xd73   :  { %p2264_p7 = por %p2263_p6, %p2262_p5 }
 0xd75   :  { %2024 = vmatpush3.bf16.msra.mxu1 %v1577_v41  ;;  %p2265_p8 = pnand %p2264_p7, %p2258_p4 }
 0xe43   :  { %v1530_v43 = vpop.f32.mrb[28].mxu1 }
 0xe44   :  { %v1537_v45 = vadd.f32 %v1530_v43, %v2828_v11  ;;  %v2019_v46 = vpop.f32.mrb[29].mxu1 }
 0xe45   :  { %v1533_v55 = vpop.f32.mrb[30].mxu1  ;;  %v106_v46 = vld [vmem:[#allocation8 + $0x16] ss:$0 sm:$0xff] }
 0xe46   :  { %v3124_v59 = vadd.f32 %v1537_v45, %v96_v36  ;;  %v1538_v62 = vadd.f32 %v1533_v55, %v2830_v22  ;;  %v2020_v51 = vpop.f32.mrb[31].mxu1 }
 0xe48   :  { %v3127_v63 = vadd.f32 %v1538_v62, %v96_v36  ;;  %v1541_v61 = vsel %vm139_vm0, %v3124_v59, 0.0 }
 0xe49   :  { %1542 = vadd.xlane.f32.xlu1 %v1541_v61 }
 0xe4a   :  { %v1544_v31 = vsel %vm139_vm0, %v3127_v63, 0.0 }
 0xe4b   :  { %1545 = vadd.xlane.f32.xlu0 %v1544_v31 }
 0xed6   :  { %v1543_v13 = vpop.xlane.xlu1 %1542 }
 0xed7   :  { %v1547_v12 = vmul.f32 0.03125, %v1543_v13 }
 0xed8   :  { %v1546_v11 = vpop.xlane.xlu0 %1545 }
 0xed9   :  { %v1549_v58 = vsub.f32 %v3124_v59, %v1547_v12  ;;  %v1548_v60 = vmul.f32 0.03125, %v1546_v11 }
 0xedb   :  { %v1550_v4 = vsub.f32 %v3127_v63, %v1548_v60  ;;  %v1551_v22 = vmul.f32 %v1549_v58, %v1549_v58 }
 0xedd   :  { %v1553_v54 = vsel %vm139_vm0, %v1551_v22, 0.0  ;;  %v1552_v48 = vmul.f32 %v1550_v4, %v1550_v4 }
 0xede   :  { %1554 = vadd.xlane.f32.xlu0 %v1553_v54 }
 0xedf   :  { %v1556_v2 = vsel %vm139_vm0, %v1552_v48, 0.0 }
 0xee0   :  { %1557 = vadd.xlane.f32.xlu1 %v1556_v2 }
 0xf6b   :  { %v1555_v24 = vpop.xlane.xlu0 %1554 }
 0xf6c   :  { %v1559_v14 = vmul.f32 0.03125, %v1555_v24 }
 0xf6d   :  { %v1558_v35 = vpop.xlane.xlu1 %1557 }
 0xf6e   :  { %v1561_v6 = vadd.f32 1e-12, %v1559_v14  ;;  %v1560_v17 = vmul.f32 0.03125, %v1558_v35 }
 0xf70   :  { %2165 = vrsqrt.f32 %v1561_v6  ;;  %v1562_v23 = vadd.f32 1e-12, %v1560_v17 }
 0xf72   :  { %2167 = vrsqrt.f32 %v1562_v23 }
 0xf7a   :  { %v2166_v40 = vpop.eup %2165 }
 0xf7b   :  { %v1565_v18 = vmul.f32 %v2166_v40, %v1549_v58 }
 0xf7c   :  { %v2168_v0 = vpop.eup %2167 }
 0xf7d   :  { %v1567_v49 = vmul.f32 %v1565_v18, %v100_v44  ;;  %v1566_v52 = vmul.f32 %v2168_v0, %v1550_v4 }
 0xf7f   :  { %v1568_v32 = vmul.f32 %v1566_v52, %v100_v44  ;;  %v1569_v26 = vadd.f32 %v1567_v49, %v104_v53 }
 0xf81   :  { %v1570_v10 = vadd.f32 %v1568_v32, %v104_v53 }
 0xf83   :  { %v1575_v57 = vpack.c.bf16 %v1570_v10, %v1569_v26 }
 0xf85   :  { %2026 = vmatmul.mubr.msk.bf16.vlgmr.msra.gmra.mrb[32].mxu1 %vm139_vm0, %v1575_v57 }
0x1058   :  { %v1615_v42 = vpop.f32.mrb[32].mxu1 }
0x1059   :  { %v1616_v30 = vadd.f32 %v1615_v42, %v105_v37  ;;  %v2027_v28 = vpop.f32.mrb[33].mxu1 }
0x105a   :  { %v1618_v38 = vpop.f32.mrb[34].mxu1 }
0x105b   :  { %v1619_v39 = vadd.f32 %v1618_v38, %v105_v37  ;;  %v2028_v33 = vpop.f32.mrb[35].mxu1  ;;  %v1622_v36 = vmax.f32 %v1616_v30, 0.0 }
0x105d   :  { %v1623_v43 = vmax.f32 %v1619_v39, 0.0 }
0x105f   :  { %v1632_v45 = vpack.c.bf16 %v1623_v43, %v1622_v36 }
0x1061   :  { %2038 = vmatmul.mubr.msk.bf16.vlgmr.msra.gmra.mrb[28].mxu0 %vm247_vm9, %v1632_v45 }
0x1134   :  { %v1674_v55 = vpop.f32.mrb[28].mxu0 }
0x1135   :  { %v1681_v62 = vadd.f32 %v1674_v55, %v3124_v59  ;;  %v2039_v51 = vpop.f32.mrb[29].mxu0 }
0x1136   :  { %v1677_v61 = vpop.f32.mrb[30].mxu0 }
0x1137   :  { %v1683_v16 = vadd.f32 %v1681_v62, %v106_v46  ;;  %v1682_v31 = vadd.f32 %v1677_v61, %v3127_v63  ;;  %v2040_v13 = vpop.f32.mrb[31].mxu0 }
0x1139   :  { %1685 = vst.msk [vmem:[#allocation10] sm:$0xff] %vm139_vm0, %v1683_v16  ;;  %v1684_v12 = vadd.f32 %v1682_v31, %v106_v46 }
0x113b   :  { %1686 = vst.msk [vmem:[#allocation10 + $0x8] sm:$0xff] %vm139_vm0, %v1684_v12 }
0x113c   :  { %2268 = shalt.err (!%p2265_p8)
}
0x113d   :  { %s2269_s15 = scalar_lea.hbm %s3196_s10, 256 }
0x113e   :  { %p2270_p9 = scmp.ne.s32.totalorder %s3196_s10, %s2269_s15  ;;  %p2273_p10 = scmp.lt.u32.totalorder %s2269_s15, %s3196_s10 }
0x1140   :  { %p2275_p11 = pnand %p2273_p10, %p2270_p9 }
0x1142   :  { %2278 = shalt.err (!%p2275_p11)
}
0x1143   :  { %1698 = dma.vmem_to_hbm [thread:$0]  %s1693_s1, 256, %s3196_s10, [#allocation4], %s2289_s25, %s2289_s25, %s2290_s26  }
0x1144   :  { %2285 = dma.done.wait [#allocation4], 256  }
0x1145   :  { %2286 = vsyncadd [#allocation4], 4294967040 }
0x1146   :  { %1702 = vsyncpa [#allocation3], 1 }
0x1147   :  { %1703 = vsyncpa [#allocation6], 1 }
0x1148   :  { %1704 = vsyncpa [#allocation9], 1 }
0x1149   :  { %1705 = vsyncpa [#allocation4], 1 }

</bundles_post_ra>
